<compile_context>
chip_gen: v5e
topology: v5e:2x2
jax: 0.10.0
libtpu: 0.0.40
codegen_flags: <defaults>
</compile_context>

<pallas_src>
import math
import functools

import jax
import jax.numpy as jnp
from jax.experimental import pallas as pl
from jax.experimental.pallas import tpu as pltpu

NEG = -1.0e12  # PyTorch uses masked_fill(..., -1e12)


def _row_tile(m):
    """Largest row tile that divides m (keeps blocks (8,128)-legal)."""
    for t in (512, 256, 128, 64, 32, 16, 8):
        if m % t == 0:
            return t
    return m


# ----------------------------- fused linear kernel (QKV projection) -----------------------------
def _linear_kernel(x_ref, w_ref, b_ref, o_ref):
    y = jnp.dot(x_ref[...].astype(jnp.bfloat16), w_ref[...].astype(jnp.bfloat16),
                preferred_element_type=jnp.float32) + b_ref[...]
    o_ref[...] = y.astype(o_ref.dtype)


def pallas_linear(x2d, w, b):
    M, K = x2d.shape
    N = w.shape[1]
    tm = _row_tile(M)
    return pl.pallas_call(
        _linear_kernel,
        out_shape=jax.ShapeDtypeStruct((M, N), jnp.float32),
        grid=(M // tm,),
        in_specs=[
            pl.BlockSpec((tm, K), lambda i: (i, 0)),
            pl.BlockSpec((K, N), lambda i: (0, 0)),
            pl.BlockSpec((1, N), lambda i: (0, 0)),
        ],
        out_specs=pl.BlockSpec((tm, N), lambda i: (i, 0)),
        compiler_params=pltpu.CompilerParams(dimension_semantics=("parallel",)),
    )(x2d, w, b.reshape(1, N))


# ------------- fused tail: (+bias) SiLU -> ws2 -> +res -> LN -> FFN (Lin-GELU-Lin) -> +res -> LN -------------
def _tail_ffn_kernel(a_ref, bf_ref, w2_ref, b2_ref, r_ref, g1_ref, bb1_ref,
                     wf1_ref, bf1_ref, wf2_ref, bf2_ref, g2_ref, bb2_ref, o_ref):
    # scale_linear tail
    h1 = a_ref[...] + bf_ref[...]
    h1 = h1 * jax.nn.sigmoid(h1)                       # SiLU (f32)
    h2 = jnp.dot(h1.astype(jnp.bfloat16), w2_ref[...].astype(jnp.bfloat16),
                 preferred_element_type=jnp.float32) + b2_ref[...]
    xr = h2 + r_ref[...]
    mu = jnp.mean(xr, axis=-1, keepdims=True)
    var = jnp.mean(jnp.square(xr - mu), axis=-1, keepdims=True)
    x1 = ((xr - mu) * jax.lax.rsqrt(var + 1e-6)) * g1_ref[...] + bb1_ref[...]

    # PositionWiseFeedForward: Linear -> GELU -> Linear -> +residual -> LayerNorm
    h = jnp.dot(x1.astype(jnp.bfloat16), wf1_ref[...].astype(jnp.bfloat16),
                preferred_element_type=jnp.float32) + bf1_ref[...]
    # TODO(synk): PyTorch nn.GELU default is exact erf; tanh approximation used for Mosaic-safe lowering.
    h = jax.nn.gelu(h, approximate=True)
    y = jnp.dot(h.astype(jnp.bfloat16), wf2_ref[...].astype(jnp.bfloat16),
                preferred_element_type=jnp.float32) + bf2_ref[...]
    y = y + x1
    mu2 = jnp.mean(y, axis=-1, keepdims=True)
    var2 = jnp.mean(jnp.square(y - mu2), axis=-1, keepdims=True)
    o_ref[...] = ((y - mu2) * jax.lax.rsqrt(var2 + 1e-6)) * g2_ref[...] + bb2_ref[...]


def pallas_tail_ffn(a2d, b_fold, w2, b2, r2d, g1, bb1, wf1, bf1, wf2, bf2, g2, bb2):
    M, H = a2d.shape
    F = wf1.shape[1]
    tm = _row_tile(M)
    row = lambda i: (i, 0)
    full = lambda i: (0, 0)
    return pl.pallas_call(
        _tail_ffn_kernel,
        out_shape=jax.ShapeDtypeStruct((M, H), jnp.float32),
        grid=(M // tm,),
        in_specs=[
            pl.BlockSpec((tm, H), row),      # attention accumulator
            pl.BlockSpec((1, H), full),      # folded bias
            pl.BlockSpec((H, H), full),      # ws2
            pl.BlockSpec((1, H), full),      # bs2
            pl.BlockSpec((tm, H), row),      # residual
            pl.BlockSpec((1, H), full),      # ln1 gamma
            pl.BlockSpec((1, H), full),      # ln1 beta
            pl.BlockSpec((H, F), full),      # ffn w1
            pl.BlockSpec((1, F), full),      # ffn b1
            pl.BlockSpec((F, H), full),      # ffn w2
            pl.BlockSpec((1, H), full),      # ffn b2
            pl.BlockSpec((1, H), full),      # ln2 gamma
            pl.BlockSpec((1, H), full),      # ln2 beta
        ],
        out_specs=pl.BlockSpec((tm, H), row),
        compiler_params=pltpu.CompilerParams(dimension_semantics=("parallel",)),
    )(a2d, b_fold.reshape(1, H), w2, b2.reshape(1, H), r2d,
      g1.reshape(1, H), bb1.reshape(1, H),
      wf1, bf1.reshape(1, F), wf2, bf2.reshape(1, H),
      g2.reshape(1, H), bb2.reshape(1, H))


# ----------------------------- multi-scale attention kernel -----------------------------
def _msa_kernel(db_ref, q_ref, k_ref, v_ref, nd_ref, mask_ref, bias_ref, wf_ref,
                o_ref, *, num_heads, d_k, num_scales):
    b = pl.program_id(0)
    scale = 1.0 / math.sqrt(d_k)

    q = q_ref[0].astype(jnp.bfloat16)        # [Hh, N, dk]
    k = k_ref[0].astype(jnp.bfloat16)
    v = v_ref[0].astype(jnp.bfloat16)

    # Base scores, computed ONCE and shared by all distance scales.
    sc = jnp.einsum("hqd,hkd->hqk", q, k,
                    preferred_element_type=jnp.float32) * scale       # [Hh, N, N] f32
    sc = sc + bias_ref[0][None, :, :]
    sc = jnp.where(mask_ref[0][None, :, :] == 0.0, NEG, sc)

    nd = nd_ref[0]                            # [N, N]; super-node row/col pre-padded to -1e30
    N = nd.shape[0]
    H = num_heads * d_k

    acc = jnp.zeros((N, H), jnp.float32)
    for s in range(num_scales):               # unrolled; S is small
        cut = db_ref[b, s]
        scd = jnp.where((nd < cut)[None, :, :], sc, NEG)
        m = jnp.max(scd, axis=-1, keepdims=True)
        e = jnp.exp(scd - m)
        p = e * pl.reciprocal(jnp.sum(e, axis=-1, keepdims=True), approx=True)
        out = jnp.einsum("hqk,hkd->hqd", p.astype(jnp.bfloat16), v,
                         preferred_element_type=jnp.float32)           # [Hh, N, dk]
        # folded per-scale projection: a_proj[s] fused with ws1 row-slice s, split per head
        # (head-batched matmul + cheap VPU sum over heads == out2d @ w_fold[s])
        proj = jnp.einsum("hqd,hdo->hqo", out.astype(jnp.bfloat16),
                          wf_ref[s].astype(jnp.bfloat16),
                          preferred_element_type=jnp.float32)          # [Hh, N, H]
        acc = acc + jnp.sum(proj, axis=0)
    o_ref[0] = acc.astype(o_ref.dtype)        # single lane-dense [N, H] store


def pallas_multiscale_attention(dist_bar, q4, k4, v4, new_dist, attn_mask,
                                attn_bias, w_fold, num_heads, d_k, num_scales):
    B, Hh, N, dk = q4.shape
    H = Hh * dk
    S = num_scales
    return pl.pallas_call(
        functools.partial(_msa_kernel, num_heads=num_heads, d_k=d_k,
                          num_scales=num_scales),
        out_shape=jax.ShapeDtypeStruct((B, N, H), jnp.float32),
        grid=(B,),
        in_specs=[
            pl.BlockSpec(memory_space=pltpu.MemorySpace.SMEM),          # dist_bar [B, S]
            pl.BlockSpec((1, Hh, N, dk), lambda b: (b, 0, 0, 0)),       # q
            pl.BlockSpec((1, Hh, N, dk), lambda b: (b, 0, 0, 0)),       # k
            pl.BlockSpec((1, Hh, N, dk), lambda b: (b, 0, 0, 0)),       # v
            pl.BlockSpec((1, N, N), lambda b: (b, 0, 0)),               # padded dist
            pl.BlockSpec((1, N, N), lambda b: (b, 0, 0)),               # attn_mask
            pl.BlockSpec((1, N, N), lambda b: (b, 0, 0)),               # attn_bias
            pl.BlockSpec((S, Hh, dk, H), lambda b: (0, 0, 0, 0)),       # folded per-scale proj
        ],
        out_specs=pl.BlockSpec((1, N, H), lambda b: (b, 0, 0)),
        compiler_params=pltpu.CompilerParams(dimension_semantics=("parallel",)),
    )(dist_bar, q4, k4, v4, new_dist, attn_mask, attn_bias, w_fold)


# ----------------------------- parameters -----------------------------
def init_params(key, hidden, ffn_hidden, num_scales):
    def lin(k, din, dout):
        k1, k2 = jax.random.split(k)
        w = jax.random.normal(k1, (din, dout), jnp.float32) * 0.05
        b = jax.random.normal(k2, (dout,), jnp.float32) * 0.01
        return w, b

    keys = jax.random.split(key, 16)
    p = {}
    p["wq"], p["bq"] = lin(keys[0], hidden, hidden)
    p["wk"], p["bk"] = lin(keys[1], hidden, hidden)
    p["wv"], p["bv"] = lin(keys[2], hidden, hidden)
    p["wa"], p["ba"] = [], []
    for i in range(num_scales):
        w, b = lin(keys[3 + i], hidden, hidden)
        p["wa"].append(w)
        p["ba"].append(b)
    p["ws1"], p["bs1"] = lin(keys[8], num_scales * hidden, hidden)
    p["ws2"], p["bs2"] = lin(keys[9], hidden, hidden)
    p["ln1_g"] = jnp.ones((hidden,), jnp.float32)
    p["ln1_b"] = jnp.zeros((hidden,), jnp.float32)
    # TODO(synk): PositionWiseFeedForward source not provided; standard pre-residual
    #             Linear->GELU->Linear->(+res)->LayerNorm structure assumed.
    p["wf1"], p["bf1"] = lin(keys[10], hidden, ffn_hidden)
    p["wf2"], p["bf2"] = lin(keys[11], ffn_hidden, hidden)
    p["ln2_g"] = jnp.ones((hidden,), jnp.float32)
    p["ln2_b"] = jnp.zeros((hidden,), jnp.float32)
    return p


# ----------------------------- full forward (glue + kernels) -----------------------------
def encoder_atom_layer(params, x, attn_mask, attn_bias, dist, dist_bar,
                       num_heads, num_scales):
    B, N, H = x.shape
    d_k = H // num_heads
    M = B * N
    x2d = x.reshape(M, H)
    residual = x2d

    # --- fused Q/K/V projection (one pallas_call, [H, 3H] weight) ---
    w_qkv = jnp.concatenate([params["wq"], params["wk"], params["wv"]], axis=1)
    b_qkv = jnp.concatenate([params["bq"], params["bk"], params["bv"]], axis=0)
    qkv = pallas_linear(x2d, w_qkv, b_qkv)                      # [M, 3H]
    q, k, v = jnp.split(qkv, 3, axis=-1)

    def to_heads(t):
        return t.reshape(B, N, num_heads, d_k).transpose(0, 2, 1, 3)

    q4, k4, v4 = to_heads(q), to_heads(k), to_heads(v)

    # Super-node row/col padded with a huge negative value so `nd < cut` is always True there
    # (equivalent to PyTorch forcing dist_mask[:, :, 0, :] = dist_mask[:, :, :, 0] = 1).
    new_dist = jnp.pad(dist, ((0, 0), (1, 0), (1, 0)), constant_values=-1.0e30)

    # Fold per-scale a_proj[i] with the row-slice of scale_linear's first Linear; reshape the
    # hidden-in axis per head so the attention kernel never needs a head-concat.
    ws1 = params["ws1"]
    w_fold = jnp.stack(
        [params["wa"][s] @ ws1[s * H:(s + 1) * H] for s in range(num_scales)], axis=0)
    w_fold = w_fold.reshape(num_scales, num_heads, d_k, H)
    b_fold = sum(params["ba"][s] @ ws1[s * H:(s + 1) * H] for s in range(num_scales)) \
        + params["bs1"]

    attn_acc = pallas_multiscale_attention(
        dist_bar, q4, k4, v4, new_dist, attn_mask, attn_bias, w_fold,
        num_heads, d_k, num_scales)                              # [B, N, H]

    # (+folded bias) -> SiLU -> ws2 -> +residual -> LN(1e-6) -> FFN Lin-GELU-Lin -> +res -> LN,
    # all fused in a single row-tiled kernel (no intermediate HBM roundtrip).
    out = pallas_tail_ffn(attn_acc.reshape(M, H), b_fold,
                          params["ws2"], params["bs2"], residual,
                          params["ln1_g"], params["ln1_b"],
                          params["wf1"], params["bf1"],
                          params["wf2"], params["bf2"],
                          params["ln2_g"], params["ln2_b"])
    return out.reshape(B, N, H)


# ----------------------------- demo -----------------------------
if __name__ == "__main__":
    B, N, H, num_heads, ffn_hidden, num_scales = 2, 8, 32, 4, 64, 3

    key = jax.random.PRNGKey(0)
    kx, kb, kd, kp = jax.random.split(key, 4)

    x = jax.random.normal(kx, (B, N, H), jnp.float32)
    attn_mask = jnp.ones((B, N, N), jnp.float32)
    attn_mask = attn_mask.at[1, :, N - 1].set(0.0)              # mask last token of batch 1
    attn_bias = jax.random.normal(kb, (B, N, N), jnp.float32) * 0.1
    dist = jax.random.uniform(kd, (B, N - 1, N - 1), jnp.float32, 0.5, 6.0)
    dist = 0.5 * (dist + jnp.swapaxes(dist, -1, -2))            # symmetric distances
    dist_bar = jnp.array([[1.5, 3.0, 6.5],
                          [1.5, 3.0, 6.5]], jnp.float32)        # [B, num_scales] cutoffs

    params = init_params(kp, H, ffn_hidden, num_scales)

    fwd = jax.jit(functools.partial(encoder_atom_layer,
                                    num_heads=num_heads, num_scales=num_scales))
    out = fwd(params, x, attn_mask, attn_bias, dist, dist_bar)
    out = jax.block_until_ready(out)

    assert out.shape == (B, N, H)
    assert bool(jnp.all(jnp.isfinite(out)))
    print("KERNEL_OK")
</pallas_src>

<mosaic_0001>
module attributes {stable_mosaic.version = 11 : i64} {
  func.func @_msa_kernel(%arg0: i32, %arg1: memref<2x3xf32, #tpu.memory_space<smem>>, %arg2: memref<1x4x8x8xf32, #tpu.memory_space<vmem>>, %arg3: memref<1x4x8x8xf32, #tpu.memory_space<vmem>>, %arg4: memref<1x4x8x8xf32, #tpu.memory_space<vmem>>, %arg5: memref<1x8x8xf32, #tpu.memory_space<vmem>>, %arg6: memref<1x8x8xf32, #tpu.memory_space<vmem>>, %arg7: memref<1x8x8xf32, #tpu.memory_space<vmem>>, %arg8: memref<3x4x8x32xf32, #tpu.memory_space<vmem>>, %arg9: memref<1x8x32xf32, #tpu.memory_space<vmem>>) attributes {dimension_semantics = [#tpu.dimension_semantics<parallel>], iteration_bounds = array<i64: 2>, scalar_prefetch = 0 : i64, scratch_operands = 0 : i64, tpu.core_type = #tpu.core_type<tc>, window_params = [{transform_indices = @transform_0, window_bounds = array<i64: 2, 3>}, {transform_indices = @transform_1, window_bounds = array<i64: 1, 4, 8, 8>}, {transform_indices = @transform_2, window_bounds = array<i64: 1, 4, 8, 8>}, {transform_indices = @transform_3, window_bounds = array<i64: 1, 4, 8, 8>}, {transform_indices = @transform_4, window_bounds = array<i64: 1, 8, 8>}, {transform_indices = @transform_5, window_bounds = array<i64: 1, 8, 8>}, {transform_indices = @transform_6, window_bounds = array<i64: 1, 8, 8>}, {pipeline_mode = #tpu.pipeline_mode<synchronous>, transform_indices = @transform_7, window_bounds = array<i64: 3, 4, 8, 32>}, {transform_indices = @transform_8, window_bounds = array<i64: 1, 8, 32>}]} {
    %c0 = arith.constant 0 : index
    %c0_0 = arith.constant 0 : index
    %c0_1 = arith.constant 0 : index
    %c0_2 = arith.constant 0 : index
    %0 = vector.load %arg2[%c0, %c0_0, %c0_1, %c0_2] : memref<1x4x8x8xf32, #tpu.memory_space<vmem>>, vector<1x4x8x8xf32>
    %1 = vector.shape_cast %0 : vector<1x4x8x8xf32> to vector<4x8x8xf32>
    %2 = arith.truncf %1 : vector<4x8x8xf32> to vector<4x8x8xbf16>
    %c0_3 = arith.constant 0 : index
    %c0_4 = arith.constant 0 : index
    %c0_5 = arith.constant 0 : index
    %c0_6 = arith.constant 0 : index
    %3 = vector.load %arg3[%c0_3, %c0_4, %c0_5, %c0_6] : memref<1x4x8x8xf32, #tpu.memory_space<vmem>>, vector<1x4x8x8xf32>
    %4 = vector.shape_cast %3 : vector<1x4x8x8xf32> to vector<4x8x8xf32>
    %5 = arith.truncf %4 : vector<4x8x8xf32> to vector<4x8x8xbf16>
    %c0_7 = arith.constant 0 : index
    %c0_8 = arith.constant 0 : index
    %c0_9 = arith.constant 0 : index
    %c0_10 = arith.constant 0 : index
    %6 = vector.load %arg4[%c0_7, %c0_8, %c0_9, %c0_10] : memref<1x4x8x8xf32, #tpu.memory_space<vmem>>, vector<1x4x8x8xf32>
    %7 = vector.shape_cast %6 : vector<1x4x8x8xf32> to vector<4x8x8xf32>
    %8 = arith.truncf %7 : vector<4x8x8xf32> to vector<4x8x8xbf16>
    "tpu.trace_start"() <{level = 10 : i32, message = "hqd,hkd->hqk"}> : () -> ()
    %cst = arith.constant dense<0.000000e+00> : vector<4x8x8xf32>
    %9 = tpu.matmul %2, %5, %cst {dimension_numbers = #tpu.dot_dimension_numbers<[2], [2], [1], [1], [0, 0, 0, 1, 1, 1], [0], [0]>} : vector<4x8x8xbf16>, vector<4x8x8xbf16>, vector<4x8x8xf32> -> vector<4x8x8xf32>
    "tpu.trace_stop"() : () -> ()
    %cst_11 = arith.constant 0.353553385 : f32
    %10 = vector.broadcast %cst_11 : f32 to vector<4x8x8xf32>
    %11 = arith.mulf %9, %10 : vector<4x8x8xf32>
    %c0_12 = arith.constant 0 : index
    %c0_13 = arith.constant 0 : index
    %c0_14 = arith.constant 0 : index
    %12 = vector.load %arg7[%c0_12, %c0_13, %c0_14] : memref<1x8x8xf32, #tpu.memory_space<vmem>>, vector<1x8x8xf32>
    %13 = vector.shape_cast %12 : vector<1x8x8xf32> to vector<8x8xf32>
    %14 = vector.shape_cast %13 : vector<8x8xf32> to vector<1x8x8xf32>
    %15 = vector.broadcast %14 : vector<1x8x8xf32> to vector<4x8x8xf32>
    %16 = arith.addf %11, %15 : vector<4x8x8xf32>
    %c0_15 = arith.constant 0 : index
    %c0_16 = arith.constant 0 : index
    %c0_17 = arith.constant 0 : index
    %17 = vector.load %arg6[%c0_15, %c0_16, %c0_17] : memref<1x8x8xf32, #tpu.memory_space<vmem>>, vector<1x8x8xf32>
    %18 = vector.shape_cast %17 : vector<1x8x8xf32> to vector<8x8xf32>
    %19 = vector.shape_cast %18 : vector<8x8xf32> to vector<1x8x8xf32>
    %cst_18 = arith.constant 0.000000e+00 : f32
    %20 = vector.broadcast %cst_18 : f32 to vector<1x8x8xf32>
    %21 = arith.cmpf oeq, %19, %20 : vector<1x8x8xf32>
    %cst_19 = arith.constant -9.99999995E+11 : f32
    %22 = vector.shape_cast %21 : vector<1x8x8xi1> to vector<1x8x8xi1>
    %23 = vector.broadcast %22 : vector<1x8x8xi1> to vector<4x8x8xi1>
    %24 = vector.broadcast %cst_19 : f32 to vector<4x8x8xf32>
    %25 = arith.select %23, %24, %16 : vector<4x8x8xi1>, vector<4x8x8xf32>
    %c0_20 = arith.constant 0 : index
    %c0_21 = arith.constant 0 : index
    %c0_22 = arith.constant 0 : index
    %26 = vector.load %arg5[%c0_20, %c0_21, %c0_22] : memref<1x8x8xf32, #tpu.memory_space<vmem>>, vector<1x8x8xf32>
    %27 = vector.shape_cast %26 : vector<1x8x8xf32> to vector<8x8xf32>
    %cst_23 = arith.constant 0.000000e+00 : f32
    %28 = vector.broadcast %cst_23 : f32 to vector<8x32xf32>
    %29 = arith.index_cast %arg0 : i32 to index
    %c0_24 = arith.constant 0 : index
    %30 = memref.load %arg1[%29, %c0_24] : memref<2x3xf32, #tpu.memory_space<smem>>
    %31 = vector.broadcast %30 : f32 to vector<8x8xf32>
    %32 = arith.cmpf olt, %27, %31 : vector<8x8xf32>
    %33 = vector.shape_cast %32 : vector<8x8xi1> to vector<1x8x8xi1>
    %cst_25 = arith.constant -9.99999995E+11 : f32
    %34 = vector.shape_cast %33 : vector<1x8x8xi1> to vector<1x8x8xi1>
    %35 = vector.broadcast %34 : vector<1x8x8xi1> to vector<4x8x8xi1>
    %36 = vector.broadcast %cst_25 : f32 to vector<4x8x8xf32>
    %37 = arith.select %35, %25, %36 : vector<4x8x8xi1>, vector<4x8x8xf32>
    %cst_26 = arith.constant dense<0xFF800000> : vector<4x8xf32>
    %38 = vector.multi_reduction <maximumf>, %37, %cst_26 [2] : vector<4x8x8xf32> to vector<4x8xf32>
    %39 = vector.shape_cast %38 : vector<4x8xf32> to vector<4x8x1xf32>
    %40 = vector.broadcast %39 : vector<4x8x1xf32> to vector<4x8x8xf32>
    %41 = arith.subf %37, %40 : vector<4x8x8xf32>
    %42 = math.exp %41 : vector<4x8x8xf32>
    %cst_27 = arith.constant dense<0.000000e+00> : vector<4x8xf32>
    %43 = vector.multi_reduction <add>, %42, %cst_27 [2] : vector<4x8x8xf32> to vector<4x8xf32>
    %44 = vector.shape_cast %43 : vector<4x8xf32> to vector<4x8x1xf32>
    %45 = tpu.reciprocal %44 {approx = true} : vector<4x8x1xf32> -> vector<4x8x1xf32>
    %46 = vector.broadcast %45 : vector<4x8x1xf32> to vector<4x8x8xf32>
    %47 = arith.mulf %42, %46 : vector<4x8x8xf32>
    %48 = arith.truncf %47 : vector<4x8x8xf32> to vector<4x8x8xbf16>
    "tpu.trace_start"() <{level = 10 : i32, message = "hqk,hkd->hqd"}> : () -> ()
    %cst_28 = arith.constant dense<0.000000e+00> : vector<4x8x8xf32>
    %49 = tpu.matmul %48, %8, %cst_28 {dimension_numbers = #tpu.dot_dimension_numbers<[2], [1], [1], [2], [0, 0, 0, 1, 1, 2], [0], [0]>} : vector<4x8x8xbf16>, vector<4x8x8xbf16>, vector<4x8x8xf32> -> vector<4x8x8xf32>
    "tpu.trace_stop"() : () -> ()
    %50 = arith.truncf %49 : vector<4x8x8xf32> to vector<4x8x8xbf16>
    %c0_29 = arith.constant 0 : index
    %c0_30 = arith.constant 0 : index
    %c0_31 = arith.constant 0 : index
    %c0_32 = arith.constant 0 : index
    %51 = vector.load %arg8[%c0_29, %c0_30, %c0_31, %c0_32] : memref<3x4x8x32xf32, #tpu.memory_space<vmem>>, vector<1x4x8x32xf32>
    %52 = vector.shape_cast %51 : vector<1x4x8x32xf32> to vector<4x8x32xf32>
    %53 = arith.truncf %52 : vector<4x8x32xf32> to vector<4x8x32xbf16>
    "tpu.trace_start"() <{level = 10 : i32, message = "hqd,hdo->hqo"}> : () -> ()
    %cst_33 = arith.constant dense<0.000000e+00> : vector<4x8x32xf32>
    %54 = tpu.matmul %50, %53, %cst_33 {dimension_numbers = #tpu.dot_dimension_numbers<[2], [1], [1], [2], [0, 0, 0, 1, 1, 2], [0], [0]>} : vector<4x8x8xbf16>, vector<4x8x32xbf16>, vector<4x8x32xf32> -> vector<4x8x32xf32>
    "tpu.trace_stop"() : () -> ()
    %cst_34 = arith.constant dense<0.000000e+00> : vector<8x32xf32>
    %55 = vector.multi_reduction <add>, %54, %cst_34 [0] : vector<4x8x32xf32> to vector<8x32xf32>
    %56 = arith.addf %28, %55 : vector<8x32xf32>
    %57 = arith.index_cast %arg0 : i32 to index
    %c1 = arith.constant 1 : index
    %58 = memref.load %arg1[%57, %c1] : memref<2x3xf32, #tpu.memory_space<smem>>
    %59 = vector.broadcast %58 : f32 to vector<8x8xf32>
    %60 = arith.cmpf olt, %27, %59 : vector<8x8xf32>
    %61 = vector.shape_cast %60 : vector<8x8xi1> to vector<1x8x8xi1>
    %cst_35 = arith.constant -9.99999995E+11 : f32
    %62 = vector.shape_cast %61 : vector<1x8x8xi1> to vector<1x8x8xi1>
    %63 = vector.broadcast %62 : vector<1x8x8xi1> to vector<4x8x8xi1>
    %64 = vector.broadcast %cst_35 : f32 to vector<4x8x8xf32>
    %65 = arith.select %63, %25, %64 : vector<4x8x8xi1>, vector<4x8x8xf32>
    %cst_36 = arith.constant dense<0xFF800000> : vector<4x8xf32>
    %66 = vector.multi_reduction <maximumf>, %65, %cst_36 [2] : vector<4x8x8xf32> to vector<4x8xf32>
    %67 = vector.shape_cast %66 : vector<4x8xf32> to vector<4x8x1xf32>
    %68 = vector.broadcast %67 : vector<4x8x1xf32> to vector<4x8x8xf32>
    %69 = arith.subf %65, %68 : vector<4x8x8xf32>
    %70 = math.exp %69 : vector<4x8x8xf32>
    %cst_37 = arith.constant dense<0.000000e+00> : vector<4x8xf32>
    %71 = vector.multi_reduction <add>, %70, %cst_37 [2] : vector<4x8x8xf32> to vector<4x8xf32>
    %72 = vector.shape_cast %71 : vector<4x8xf32> to vector<4x8x1xf32>
    %73 = tpu.reciprocal %72 {approx = true} : vector<4x8x1xf32> -> vector<4x8x1xf32>
    %74 = vector.broadcast %73 : vector<4x8x1xf32> to vector<4x8x8xf32>
    %75 = arith.mulf %70, %74 : vector<4x8x8xf32>
    %76 = arith.truncf %75 : vector<4x8x8xf32> to vector<4x8x8xbf16>
    "tpu.trace_start"() <{level = 10 : i32, message = "hqk,hkd->hqd"}> : () -> ()
    %cst_38 = arith.constant dense<0.000000e+00> : vector<4x8x8xf32>
    %77 = tpu.matmul %76, %8, %cst_38 {dimension_numbers = #tpu.dot_dimension_numbers<[2], [1], [1], [2], [0, 0, 0, 1, 1, 2], [0], [0]>} : vector<4x8x8xbf16>, vector<4x8x8xbf16>, vector<4x8x8xf32> -> vector<4x8x8xf32>
    "tpu.trace_stop"() : () -> ()
    %78 = arith.truncf %77 : vector<4x8x8xf32> to vector<4x8x8xbf16>
    %c1_39 = arith.constant 1 : index
    %c0_40 = arith.constant 0 : index
    %c0_41 = arith.constant 0 : index
    %c0_42 = arith.constant 0 : index
    %79 = vector.load %arg8[%c1_39, %c0_40, %c0_41, %c0_42] : memref<3x4x8x32xf32, #tpu.memory_space<vmem>>, vector<1x4x8x32xf32>
    %80 = vector.shape_cast %79 : vector<1x4x8x32xf32> to vector<4x8x32xf32>
    %81 = arith.truncf %80 : vector<4x8x32xf32> to vector<4x8x32xbf16>
    "tpu.trace_start"() <{level = 10 : i32, message = "hqd,hdo->hqo"}> : () -> ()
    %cst_43 = arith.constant dense<0.000000e+00> : vector<4x8x32xf32>
    %82 = tpu.matmul %78, %81, %cst_43 {dimension_numbers = #tpu.dot_dimension_numbers<[2], [1], [1], [2], [0, 0, 0, 1, 1, 2], [0], [0]>} : vector<4x8x8xbf16>, vector<4x8x32xbf16>, vector<4x8x32xf32> -> vector<4x8x32xf32>
    "tpu.trace_stop"() : () -> ()
    %cst_44 = arith.constant dense<0.000000e+00> : vector<8x32xf32>
    %83 = vector.multi_reduction <add>, %82, %cst_44 [0] : vector<4x8x32xf32> to vector<8x32xf32>
    %84 = arith.addf %56, %83 : vector<8x32xf32>
    %85 = arith.index_cast %arg0 : i32 to index
    %c2 = arith.constant 2 : index
    %86 = memref.load %arg1[%85, %c2] : memref<2x3xf32, #tpu.memory_space<smem>>
    %87 = vector.broadcast %86 : f32 to vector<8x8xf32>
    %88 = arith.cmpf olt, %27, %87 : vector<8x8xf32>
    %89 = vector.shape_cast %88 : vector<8x8xi1> to vector<1x8x8xi1>
    %cst_45 = arith.constant -9.99999995E+11 : f32
    %90 = vector.shape_cast %89 : vector<1x8x8xi1> to vector<1x8x8xi1>
    %91 = vector.broadcast %90 : vector<1x8x8xi1> to vector<4x8x8xi1>
    %92 = vector.broadcast %cst_45 : f32 to vector<4x8x8xf32>
    %93 = arith.select %91, %25, %92 : vector<4x8x8xi1>, vector<4x8x8xf32>
    %cst_46 = arith.constant dense<0xFF800000> : vector<4x8xf32>
    %94 = vector.multi_reduction <maximumf>, %93, %cst_46 [2] : vector<4x8x8xf32> to vector<4x8xf32>
    %95 = vector.shape_cast %94 : vector<4x8xf32> to vector<4x8x1xf32>
    %96 = vector.broadcast %95 : vector<4x8x1xf32> to vector<4x8x8xf32>
    %97 = arith.subf %93, %96 : vector<4x8x8xf32>
    %98 = math.exp %97 : vector<4x8x8xf32>
    %cst_47 = arith.constant dense<0.000000e+00> : vector<4x8xf32>
    %99 = vector.multi_reduction <add>, %98, %cst_47 [2] : vector<4x8x8xf32> to vector<4x8xf32>
    %100 = vector.shape_cast %99 : vector<4x8xf32> to vector<4x8x1xf32>
    %101 = tpu.reciprocal %100 {approx = true} : vector<4x8x1xf32> -> vector<4x8x1xf32>
    %102 = vector.broadcast %101 : vector<4x8x1xf32> to vector<4x8x8xf32>
    %103 = arith.mulf %98, %102 : vector<4x8x8xf32>
    %104 = arith.truncf %103 : vector<4x8x8xf32> to vector<4x8x8xbf16>
    "tpu.trace_start"() <{level = 10 : i32, message = "hqk,hkd->hqd"}> : () -> ()
    %cst_48 = arith.constant dense<0.000000e+00> : vector<4x8x8xf32>
    %105 = tpu.matmul %104, %8, %cst_48 {dimension_numbers = #tpu.dot_dimension_numbers<[2], [1], [1], [2], [0, 0, 0, 1, 1, 2], [0], [0]>} : vector<4x8x8xbf16>, vector<4x8x8xbf16>, vector<4x8x8xf32> -> vector<4x8x8xf32>
    "tpu.trace_stop"() : () -> ()
    %106 = arith.truncf %105 : vector<4x8x8xf32> to vector<4x8x8xbf16>
    %c2_49 = arith.constant 2 : index
    %c0_50 = arith.constant 0 : index
    %c0_51 = arith.constant 0 : index
    %c0_52 = arith.constant 0 : index
    %107 = vector.load %arg8[%c2_49, %c0_50, %c0_51, %c0_52] : memref<3x4x8x32xf32, #tpu.memory_space<vmem>>, vector<1x4x8x32xf32>
    %108 = vector.shape_cast %107 : vector<1x4x8x32xf32> to vector<4x8x32xf32>
    %109 = arith.truncf %108 : vector<4x8x32xf32> to vector<4x8x32xbf16>
    "tpu.trace_start"() <{level = 10 : i32, message = "hqd,hdo->hqo"}> : () -> ()
    %cst_53 = arith.constant dense<0.000000e+00> : vector<4x8x32xf32>
    %110 = tpu.matmul %106, %109, %cst_53 {dimension_numbers = #tpu.dot_dimension_numbers<[2], [1], [1], [2], [0, 0, 0, 1, 1, 2], [0], [0]>} : vector<4x8x8xbf16>, vector<4x8x32xbf16>, vector<4x8x32xf32> -> vector<4x8x32xf32>
    "tpu.trace_stop"() : () -> ()
    %cst_54 = arith.constant dense<0.000000e+00> : vector<8x32xf32>
    %111 = vector.multi_reduction <add>, %110, %cst_54 [0] : vector<4x8x32xf32> to vector<8x32xf32>
    %112 = arith.addf %84, %111 : vector<8x32xf32>
    %c0_55 = arith.constant 0 : index
    %c0_56 = arith.constant 0 : index
    %c0_57 = arith.constant 0 : index
    %113 = vector.load %arg9[%c0_55, %c0_56, %c0_57] : memref<1x8x32xf32, #tpu.memory_space<vmem>>, vector<1x8x32xf32>
    %114 = vector.shape_cast %113 : vector<1x8x32xf32> to vector<8x32xf32>
    %115 = vector.shape_cast %112 : vector<8x32xf32> to vector<1x8x32xf32>
    tpu.vector_store %arg9[%c0_55, %c0_56, %c0_57], %115 {strides = array<i32>} : memref<1x8x32xf32, #tpu.memory_space<vmem>>, vector<1x8x32xf32>,
    return
  }
  func.func @transform_0(%arg0: i32) -> (i32, i32) {
    %c0_i32 = arith.constant 0 : i32
    %c0_i32_0 = arith.constant 0 : i32
    %c0_i32_1 = arith.constant 0 : i32
    return %c0_i32, %c0_i32_0 : i32, i32
  }
  func.func @transform_1(%arg0: i32) -> (i32, i32, i32, i32) {
    %c0_i32 = arith.constant 0 : i32
    %c0_i32_0 = arith.constant 0 : i32
    %c0_i32_1 = arith.constant 0 : i32
    %c0_i32_2 = arith.constant 0 : i32
    return %arg0, %c0_i32, %c0_i32_0, %c0_i32_1 : i32, i32, i32, i32
  }
  func.func @transform_2(%arg0: i32) -> (i32, i32, i32, i32) {
    %c0_i32 = arith.constant 0 : i32
    %c0_i32_0 = arith.constant 0 : i32
    %c0_i32_1 = arith.constant 0 : i32
    %c0_i32_2 = arith.constant 0 : i32
    return %arg0, %c0_i32, %c0_i32_0, %c0_i32_1 : i32, i32, i32, i32
  }
  func.func @transform_3(%arg0: i32) -> (i32, i32, i32, i32) {
    %c0_i32 = arith.constant 0 : i32
    %c0_i32_0 = arith.constant 0 : i32
    %c0_i32_1 = arith.constant 0 : i32
    %c0_i32_2 = arith.constant 0 : i32
    return %arg0, %c0_i32, %c0_i32_0, %c0_i32_1 : i32, i32, i32, i32
  }
  func.func @transform_4(%arg0: i32) -> (i32, i32, i32) {
    %c0_i32 = arith.constant 0 : i32
    %c0_i32_0 = arith.constant 0 : i32
    %c0_i32_1 = arith.constant 0 : i32
    return %arg0, %c0_i32, %c0_i32_0 : i32, i32, i32
  }
  func.func @transform_5(%arg0: i32) -> (i32, i32, i32) {
    %c0_i32 = arith.constant 0 : i32
    %c0_i32_0 = arith.constant 0 : i32
    %c0_i32_1 = arith.constant 0 : i32
    return %arg0, %c0_i32, %c0_i32_0 : i32, i32, i32
  }
  func.func @transform_6(%arg0: i32) -> (i32, i32, i32) {
    %c0_i32 = arith.constant 0 : i32
    %c0_i32_0 = arith.constant 0 : i32
    %c0_i32_1 = arith.constant 0 : i32
    return %arg0, %c0_i32, %c0_i32_0 : i32, i32, i32
  }
  func.func @transform_7(%arg0: i32) -> (i32, i32, i32, i32) {
    %c0_i32 = arith.constant 0 : i32
    %c0_i32_0 = arith.constant 0 : i32
    %c0_i32_1 = arith.constant 0 : i32
    %c0_i32_2 = arith.constant 0 : i32
    %c0_i32_3 = arith.constant 0 : i32
    return %c0_i32, %c0_i32_0, %c0_i32_1, %c0_i32_2 : i32, i32, i32, i32
  }
  func.func @transform_8(%arg0: i32) -> (i32, i32, i32) {
    %c0_i32 = arith.constant 0 : i32
    %c0_i32_0 = arith.constant 0 : i32
    %c0_i32_1 = arith.constant 0 : i32
    return %arg0, %c0_i32, %c0_i32_0 : i32, i32, i32
  }
}

module attributes {stable_mosaic.version = 11 : i64} {
  func.func @_linear_kernel(%arg0: i32, %arg1: memref<16x32xf32, #tpu.memory_space<vmem>>, %arg2: memref<32x96xf32, #tpu.memory_space<vmem>>, %arg3: memref<1x96xf32, #tpu.memory_space<vmem>>, %arg4: memref<16x96xf32, #tpu.memory_space<vmem>>) attributes {dimension_semantics = [#tpu.dimension_semantics<parallel>], iteration_bounds = array<i64: 1>, scalar_prefetch = 0 : i64, scratch_operands = 0 : i64, tpu.core_type = #tpu.core_type<tc>, window_params = [{transform_indices = @transform_0, window_bounds = array<i64: 16, 32>}, {pipeline_mode = #tpu.pipeline_mode<synchronous>, transform_indices = @transform_1, window_bounds = array<i64: 32, 96>}, {pipeline_mode = #tpu.pipeline_mode<synchronous>, transform_indices = @transform_2, window_bounds = array<i64: 1, 96>}, {transform_indices = @transform_3, window_bounds = array<i64: 16, 96>}]} {
    %c0 = arith.constant 0 : index
    %c0_0 = arith.constant 0 : index
    %0 = vector.load %arg1[%c0, %c0_0] : memref<16x32xf32, #tpu.memory_space<vmem>>, vector<16x32xf32>
    %1 = arith.truncf %0 : vector<16x32xf32> to vector<16x32xbf16>
    %c0_1 = arith.constant 0 : index
    %c0_2 = arith.constant 0 : index
    %2 = vector.load %arg2[%c0_1, %c0_2] : memref<32x96xf32, #tpu.memory_space<vmem>>, vector<32x96xf32>
    %3 = arith.truncf %2 : vector<32x96xf32> to vector<32x96xbf16>
    %cst = arith.constant dense<0.000000e+00> : vector<16x96xf32>
    %4 = tpu.matmul %1, %3, %cst {dimension_numbers = #tpu.dot_dimension_numbers<[1], [0], [0], [1], [0, 0, 1, 1], [], []>} : vector<16x32xbf16>, vector<32x96xbf16>, vector<16x96xf32> -> vector<16x96xf32>
    %c0_3 = arith.constant 0 : index
    %c0_4 = arith.constant 0 : index
    %5 = vector.load %arg3[%c0_3, %c0_4] : memref<1x96xf32, #tpu.memory_space<vmem>>, vector<1x96xf32>
    %6 = vector.broadcast %5 : vector<1x96xf32> to vector<16x96xf32>
    %7 = arith.addf %4, %6 : vector<16x96xf32>
    %c0_5 = arith.constant 0 : index
    %c0_6 = arith.constant 0 : index
    %8 = vector.load %arg4[%c0_5, %c0_6] : memref<16x96xf32, #tpu.memory_space<vmem>>, vector<16x96xf32>
    tpu.vector_store %arg4[%c0_5, %c0_6], %7 {strides = array<i32>} : memref<16x96xf32, #tpu.memory_space<vmem>>, vector<16x96xf32>,
    return
  }
  func.func @transform_0(%arg0: i32) -> (i32, i32) {
    %c0_i32 = arith.constant 0 : i32
    %c0_i32_0 = arith.constant 0 : i32
    return %arg0, %c0_i32 : i32, i32
  }
  func.func @transform_1(%arg0: i32) -> (i32, i32) {
    %c0_i32 = arith.constant 0 : i32
    %c0_i32_0 = arith.constant 0 : i32
    %c0_i32_1 = arith.constant 0 : i32
    return %c0_i32, %c0_i32_0 : i32, i32
  }
  func.func @transform_2(%arg0: i32) -> (i32, i32) {
    %c0_i32 = arith.constant 0 : i32
    %c0_i32_0 = arith.constant 0 : i32
    %c0_i32_1 = arith.constant 0 : i32
    return %c0_i32, %c0_i32_0 : i32, i32
  }
  func.func @transform_3(%arg0: i32) -> (i32, i32) {
    %c0_i32 = arith.constant 0 : i32
    %c0_i32_0 = arith.constant 0 : i32
    return %arg0, %c0_i32 : i32, i32
  }
}

module attributes {stable_mosaic.version = 11 : i64} {
  func.func @_tail_ffn_kernel(%arg0: i32, %arg1: memref<16x32xf32, #tpu.memory_space<vmem>>, %arg2: memref<1x32xf32, #tpu.memory_space<vmem>>, %arg3: memref<32x32xf32, #tpu.memory_space<vmem>>, %arg4: memref<1x32xf32, #tpu.memory_space<vmem>>, %arg5: memref<16x32xf32, #tpu.memory_space<vmem>>, %arg6: memref<1x32xf32, #tpu.memory_space<vmem>>, %arg7: memref<1x32xf32, #tpu.memory_space<vmem>>, %arg8: memref<32x64xf32, #tpu.memory_space<vmem>>, %arg9: memref<1x64xf32, #tpu.memory_space<vmem>>, %arg10: memref<64x32xf32, #tpu.memory_space<vmem>>, %arg11: memref<1x32xf32, #tpu.memory_space<vmem>>, %arg12: memref<1x32xf32, #tpu.memory_space<vmem>>, %arg13: memref<1x32xf32, #tpu.memory_space<vmem>>, %arg14: memref<16x32xf32, #tpu.memory_space<vmem>>) attributes {dimension_semantics = [#tpu.dimension_semantics<parallel>], iteration_bounds = array<i64: 1>, scalar_prefetch = 0 : i64, scratch_operands = 0 : i64, tpu.core_type = #tpu.core_type<tc>, window_params = [{transform_indices = @transform_0, window_bounds = array<i64: 16, 32>}, {pipeline_mode = #tpu.pipeline_mode<synchronous>, transform_indices = @transform_1, window_bounds = array<i64: 1, 32>}, {pipeline_mode = #tpu.pipeline_mode<synchronous>, transform_indices = @transform_2, window_bounds = array<i64: 32, 32>}, {pipeline_mode = #tpu.pipeline_mode<synchronous>, transform_indices = @transform_3, window_bounds = array<i64: 1, 32>}, {transform_indices = @transform_4, window_bounds = array<i64: 16, 32>}, {pipeline_mode = #tpu.pipeline_mode<synchronous>, transform_indices = @transform_5, window_bounds = array<i64: 1, 32>}, {pipeline_mode = #tpu.pipeline_mode<synchronous>, transform_indices = @transform_6, window_bounds = array<i64: 1, 32>}, {pipeline_mode = #tpu.pipeline_mode<synchronous>, transform_indices = @transform_7, window_bounds = array<i64: 32, 64>}, {pipeline_mode = #tpu.pipeline_mode<synchronous>, transform_indices = @transform_8, window_bounds = array<i64: 1, 64>}, {pipeline_mode = #tpu.pipeline_mode<synchronous>, transform_indices = @transform_9, window_bounds = array<i64: 64, 32>}, {pipeline_mode = #tpu.pipeline_mode<synchronous>, transform_indices = @transform_10, window_bounds = array<i64: 1, 32>}, {pipeline_mode = #tpu.pipeline_mode<synchronous>, transform_indices = @transform_11, window_bounds = array<i64: 1, 32>}, {pipeline_mode = #tpu.pipeline_mode<synchronous>, transform_indices = @transform_12, window_bounds = array<i64: 1, 32>}, {transform_indices = @transform_13, window_bounds = array<i64: 16, 32>}]} {
    %c0 = arith.constant 0 : index
    %c0_0 = arith.constant 0 : index
    %0 = vector.load %arg1[%c0, %c0_0] : memref<16x32xf32, #tpu.memory_space<vmem>>, vector<16x32xf32>
    %c0_1 = arith.constant 0 : index
    %c0_2 = arith.constant 0 : index
    %1 = vector.load %arg2[%c0_1, %c0_2] : memref<1x32xf32, #tpu.memory_space<vmem>>, vector<1x32xf32>
    %2 = vector.broadcast %1 : vector<1x32xf32> to vector<16x32xf32>
    %3 = arith.addf %0, %2 : vector<16x32xf32>
    %4 = arith.negf %3 : vector<16x32xf32>
    %5 = math.exp %4 : vector<16x32xf32>
    %cst = arith.constant 1.000000e+00 : f32
    %6 = vector.broadcast %cst : f32 to vector<16x32xf32>
    %7 = arith.addf %6, %5 : vector<16x32xf32>
    %8 = arith.divf %6, %7 : vector<16x32xf32>
    %9 = arith.mulf %3, %8 : vector<16x32xf32>
    %10 = arith.truncf %9 : vector<16x32xf32> to vector<16x32xbf16>
    %c0_3 = arith.constant 0 : index
    %c0_4 = arith.constant 0 : index
    %11 = vector.load %arg3[%c0_3, %c0_4] : memref<32x32xf32, #tpu.memory_space<vmem>>, vector<32x32xf32>
    %12 = arith.truncf %11 : vector<32x32xf32> to vector<32x32xbf16>
    %cst_5 = arith.constant dense<0.000000e+00> : vector<16x32xf32>
    %13 = tpu.matmul %10, %12, %cst_5 {dimension_numbers = #tpu.dot_dimension_numbers<[1], [0], [0], [1], [0, 0, 1, 1], [], []>} : vector<16x32xbf16>, vector<32x32xbf16>, vector<16x32xf32> -> vector<16x32xf32>
    %c0_6 = arith.constant 0 : index
    %c0_7 = arith.constant 0 : index
    %14 = vector.load %arg4[%c0_6, %c0_7] : memref<1x32xf32, #tpu.memory_space<vmem>>, vector<1x32xf32>
    %15 = vector.broadcast %14 : vector<1x32xf32> to vector<16x32xf32>
    %16 = arith.addf %13, %15 : vector<16x32xf32>
    %c0_8 = arith.constant 0 : index
    %c0_9 = arith.constant 0 : index
    %17 = vector.load %arg5[%c0_8, %c0_9] : memref<16x32xf32, #tpu.memory_space<vmem>>, vector<16x32xf32>
    %18 = arith.addf %16, %17 : vector<16x32xf32>
    %cst_10 = arith.constant dense<0.000000e+00> : vector<16xf32>
    %19 = vector.multi_reduction <add>, %18, %cst_10 [1] : vector<16x32xf32> to vector<16xf32>
    %20 = vector.shape_cast %19 : vector<16xf32> to vector<16x1xf32>
    %cst_11 = arith.constant 3.200000e+01 : f32
    %21 = vector.broadcast %cst_11 : f32 to vector<16x1xf32>
    %22 = arith.divf %20, %21 : vector<16x1xf32>
    %23 = vector.broadcast %22 : vector<16x1xf32> to vector<16x32xf32>
    %24 = arith.subf %18, %23 : vector<16x32xf32>
    %25 = arith.mulf %24, %24 : vector<16x32xf32>
    %cst_12 = arith.constant dense<0.000000e+00> : vector<16xf32>
    %26 = vector.multi_reduction <add>, %25, %cst_12 [1] : vector<16x32xf32> to vector<16xf32>
    %27 = vector.shape_cast %26 : vector<16xf32> to vector<16x1xf32>
    %cst_13 = arith.constant 3.200000e+01 : f32
    %28 = vector.broadcast %cst_13 : f32 to vector<16x1xf32>
    %29 = arith.divf %27, %28 : vector<16x1xf32>
    %30 = vector.broadcast %22 : vector<16x1xf32> to vector<16x32xf32>
    %31 = arith.subf %18, %30 : vector<16x32xf32>
    %cst_14 = arith.constant 9.99999997E-7 : f32
    %32 = vector.broadcast %cst_14 : f32 to vector<16x1xf32>
    %33 = arith.addf %29, %32 : vector<16x1xf32>
    %34 = math.rsqrt %33 : vector<16x1xf32>
    %35 = vector.broadcast %34 : vector<16x1xf32> to vector<16x32xf32>
    %36 = arith.mulf %31, %35 : vector<16x32xf32>
    %c0_15 = arith.constant 0 : index
    %c0_16 = arith.constant 0 : index
    %37 = vector.load %arg6[%c0_15, %c0_16] : memref<1x32xf32, #tpu.memory_space<vmem>>, vector<1x32xf32>
    %38 = vector.broadcast %37 : vector<1x32xf32> to vector<16x32xf32>
    %39 = arith.mulf %36, %38 : vector<16x32xf32>
    %c0_17 = arith.constant 0 : index
    %c0_18 = arith.constant 0 : index
    %40 = vector.load %arg7[%c0_17, %c0_18] : memref<1x32xf32, #tpu.memory_space<vmem>>, vector<1x32xf32>
    %41 = vector.broadcast %40 : vector<1x32xf32> to vector<16x32xf32>
    %42 = arith.addf %39, %41 : vector<16x32xf32>
    %43 = arith.truncf %42 : vector<16x32xf32> to vector<16x32xbf16>
    %c0_19 = arith.constant 0 : index
    %c0_20 = arith.constant 0 : index
    %44 = vector.load %arg8[%c0_19, %c0_20] : memref<32x64xf32, #tpu.memory_space<vmem>>, vector<32x64xf32>
    %45 = arith.truncf %44 : vector<32x64xf32> to vector<32x64xbf16>
    %cst_21 = arith.constant dense<0.000000e+00> : vector<16x64xf32>
    %46 = tpu.matmul %43, %45, %cst_21 {dimension_numbers = #tpu.dot_dimension_numbers<[1], [0], [0], [1], [0, 0, 1, 1], [], []>} : vector<16x32xbf16>, vector<32x64xbf16>, vector<16x64xf32> -> vector<16x64xf32>
    %c0_22 = arith.constant 0 : index
    %c0_23 = arith.constant 0 : index
    %47 = vector.load %arg9[%c0_22, %c0_23] : memref<1x64xf32, #tpu.memory_space<vmem>>, vector<1x64xf32>
    %48 = vector.broadcast %47 : vector<1x64xf32> to vector<16x64xf32>
    %49 = arith.addf %46, %48 : vector<16x64xf32>
    %50 = arith.mulf %49, %49 : vector<16x64xf32>
    %51 = arith.mulf %49, %50 : vector<16x64xf32>
    %cst_24 = arith.constant 4.471500e-02 : f32
    %52 = vector.broadcast %cst_24 : f32 to vector<16x64xf32>
    %53 = arith.mulf %52, %51 : vector<16x64xf32>
    %54 = arith.addf %49, %53 : vector<16x64xf32>
    %cst_25 = arith.constant 0.797884583 : f32
    %55 = vector.broadcast %cst_25 : f32 to vector<16x64xf32>
    %56 = arith.mulf %55, %54 : vector<16x64xf32>
    %57 = math.tanh %56 : vector<16x64xf32>
    %cst_26 = arith.constant 1.000000e+00 : f32
    %58 = vector.broadcast %cst_26 : f32 to vector<16x64xf32>
    %59 = arith.addf %58, %57 : vector<16x64xf32>
    %cst_27 = arith.constant 5.000000e-01 : f32
    %60 = vector.broadcast %cst_27 : f32 to vector<16x64xf32>
    %61 = arith.mulf %60, %59 : vector<16x64xf32>
    %62 = arith.mulf %49, %61 : vector<16x64xf32>
    %63 = arith.truncf %62 : vector<16x64xf32> to vector<16x64xbf16>
    %c0_28 = arith.constant 0 : index
    %c0_29 = arith.constant 0 : index
    %64 = vector.load %arg10[%c0_28, %c0_29] : memref<64x32xf32, #tpu.memory_space<vmem>>, vector<64x32xf32>
    %65 = arith.truncf %64 : vector<64x32xf32> to vector<64x32xbf16>
    %cst_30 = arith.constant dense<0.000000e+00> : vector<16x32xf32>
    %66 = tpu.matmul %63, %65, %cst_30 {dimension_numbers = #tpu.dot_dimension_numbers<[1], [0], [0], [1], [0, 0, 1, 1], [], []>} : vector<16x64xbf16>, vector<64x32xbf16>, vector<16x32xf32> -> vector<16x32xf32>
    %c0_31 = arith.constant 0 : index
    %c0_32 = arith.constant 0 : index
    %67 = vector.load %arg11[%c0_31, %c0_32] : memref<1x32xf32, #tpu.memory_space<vmem>>, vector<1x32xf32>
    %68 = vector.broadcast %67 : vector<1x32xf32> to vector<16x32xf32>
    %69 = arith.addf %66, %68 : vector<16x32xf32>
    %70 = arith.addf %69, %42 : vector<16x32xf32>
    %cst_33 = arith.constant dense<0.000000e+00> : vector<16xf32>
    %71 = vector.multi_reduction <add>, %70, %cst_33 [1] : vector<16x32xf32> to vector<16xf32>
    %72 = vector.shape_cast %71 : vector<16xf32> to vector<16x1xf32>
    %cst_34 = arith.constant 3.200000e+01 : f32
    %73 = vector.broadcast %cst_34 : f32 to vector<16x1xf32>
    %74 = arith.divf %72, %73 : vector<16x1xf32>
    %75 = vector.broadcast %74 : vector<16x1xf32> to vector<16x32xf32>
    %76 = arith.subf %70, %75 : vector<16x32xf32>
    %77 = arith.mulf %76, %76 : vector<16x32xf32>
    %cst_35 = arith.constant dense<0.000000e+00> : vector<16xf32>
    %78 = vector.multi_reduction <add>, %77, %cst_35 [1] : vector<16x32xf32> to vector<16xf32>
    %79 = vector.shape_cast %78 : vector<16xf32> to vector<16x1xf32>
    %cst_36 = arith.constant 3.200000e+01 : f32
    %80 = vector.broadcast %cst_36 : f32 to vector<16x1xf32>
    %81 = arith.divf %79, %80 : vector<16x1xf32>
    %82 = vector.broadcast %74 : vector<16x1xf32> to vector<16x32xf32>
    %83 = arith.subf %70, %82 : vector<16x32xf32>
    %cst_37 = arith.constant 9.99999997E-7 : f32
    %84 = vector.broadcast %cst_37 : f32 to vector<16x1xf32>
    %85 = arith.addf %81, %84 : vector<16x1xf32>
    %86 = math.rsqrt %85 : vector<16x1xf32>
    %87 = vector.broadcast %86 : vector<16x1xf32> to vector<16x32xf32>
    %88 = arith.mulf %83, %87 : vector<16x32xf32>
    %c0_38 = arith.constant 0 : index
    %c0_39 = arith.constant 0 : index
    %89 = vector.load %arg12[%c0_38, %c0_39] : memref<1x32xf32, #tpu.memory_space<vmem>>, vector<1x32xf32>
    %90 = vector.broadcast %89 : vector<1x32xf32> to vector<16x32xf32>
    %91 = arith.mulf %88, %90 : vector<16x32xf32>
    %c0_40 = arith.constant 0 : index
    %c0_41 = arith.constant 0 : index
    %92 = vector.load %arg13[%c0_40, %c0_41] : memref<1x32xf32, #tpu.memory_space<vmem>>, vector<1x32xf32>
    %93 = vector.broadcast %92 : vector<1x32xf32> to vector<16x32xf32>
    %94 = arith.addf %91, %93 : vector<16x32xf32>
    %c0_42 = arith.constant 0 : index
    %c0_43 = arith.constant 0 : index
    %95 = vector.load %arg14[%c0_42, %c0_43] : memref<16x32xf32, #tpu.memory_space<vmem>>, vector<16x32xf32>
    tpu.vector_store %arg14[%c0_42, %c0_43], %94 {strides = array<i32>} : memref<16x32xf32, #tpu.memory_space<vmem>>, vector<16x32xf32>,
    return
  }
  func.func @transform_0(%arg0: i32) -> (i32, i32) {
    %c0_i32 = arith.constant 0 : i32
    %c0_i32_0 = arith.constant 0 : i32
    return %arg0, %c0_i32 : i32, i32
  }
  func.func @transform_1(%arg0: i32) -> (i32, i32) {
    %c0_i32 = arith.constant 0 : i32
    %c0_i32_0 = arith.constant 0 : i32
    %c0_i32_1 = arith.constant 0 : i32
    return %c0_i32, %c0_i32_0 : i32, i32
  }
  func.func @transform_2(%arg0: i32) -> (i32, i32) {
    %c0_i32 = arith.constant 0 : i32
    %c0_i32_0 = arith.constant 0 : i32
    %c0_i32_1 = arith.constant 0 : i32
    return %c0_i32, %c0_i32_0 : i32, i32
  }
  func.func @transform_3(%arg0: i32) -> (i32, i32) {
    %c0_i32 = arith.constant 0 : i32
    %c0_i32_0 = arith.constant 0 : i32
    %c0_i32_1 = arith.constant 0 : i32
    return %c0_i32, %c0_i32_0 : i32, i32
  }
  func.func @transform_4(%arg0: i32) -> (i32, i32) {
    %c0_i32 = arith.constant 0 : i32
    %c0_i32_0 = arith.constant 0 : i32
    return %arg0, %c0_i32 : i32, i32
  }
  func.func @transform_5(%arg0: i32) -> (i32, i32) {
    %c0_i32 = arith.constant 0 : i32
    %c0_i32_0 = arith.constant 0 : i32
    %c0_i32_1 = arith.constant 0 : i32
    return %c0_i32, %c0_i32_0 : i32, i32
  }
  func.func @transform_6(%arg0: i32) -> (i32, i32) {
    %c0_i32 = arith.constant 0 : i32
    %c0_i32_0 = arith.constant 0 : i32
    %c0_i32_1 = arith.constant 0 : i32
    return %c0_i32, %c0_i32_0 : i32, i32
  }
  func.func @transform_7(%arg0: i32) -> (i32, i32) {
    %c0_i32 = arith.constant 0 : i32
    %c0_i32_0 = arith.constant 0 : i32
    %c0_i32_1 = arith.constant 0 : i32
    return %c0_i32, %c0_i32_0 : i32, i32
  }
  func.func @transform_8(%arg0: i32) -> (i32, i32) {
    %c0_i32 = arith.constant 0 : i32
    %c0_i32_0 = arith.constant 0 : i32
    %c0_i32_1 = arith.constant 0 : i32
    return %c0_i32, %c0_i32_0 : i32, i32
  }
  func.func @transform_9(%arg0: i32) -> (i32, i32) {
    %c0_i32 = arith.constant 0 : i32
    %c0_i32_0 = arith.constant 0 : i32
    %c0_i32_1 = arith.constant 0 : i32
    return %c0_i32, %c0_i32_0 : i32, i32
  }
  func.func @transform_10(%arg0: i32) -> (i32, i32) {
    %c0_i32 = arith.constant 0 : i32
    %c0_i32_0 = arith.constant 0 : i32
    %c0_i32_1 = arith.constant 0 : i32
    return %c0_i32, %c0_i32_0 : i32, i32
  }
  func.func @transform_11(%arg0: i32) -> (i32, i32) {
    %c0_i32 = arith.constant 0 : i32
    %c0_i32_0 = arith.constant 0 : i32
    %c0_i32_1 = arith.constant 0 : i32
    return %c0_i32, %c0_i32_0 : i32, i32
  }
  func.func @transform_12(%arg0: i32) -> (i32, i32) {
    %c0_i32 = arith.constant 0 : i32
    %c0_i32_0 = arith.constant 0 : i32
    %c0_i32_1 = arith.constant 0 : i32
    return %c0_i32, %c0_i32_0 : i32, i32
  }
  func.func @transform_13(%arg0: i32) -> (i32, i32) {
    %c0_i32 = arith.constant 0 : i32
    %c0_i32_0 = arith.constant 0 : i32
    return %arg0, %c0_i32 : i32, i32
  }
}

</mosaic_0001>

<bundles_post_ra>
// kernel: encoder_atom_layer.3
= control target key start
LH: loop header
LB: loop body
LE: loop exit
PB: predicated region body
PF: predicated region fallthrough
CT: control target
= control target key end

     0   :  { %vm28_vm0 = vcmask 261120   ;;  %vm46_vm1 = vcmask 785408   ;;  %s102_s1 = inlined_call_operand.vmem [shape: f32[32,96], index: 1, kind: input, shape index: {}]   ;;  %s103_s0 = inlined_call_operand.vmem [shape: f32[16,32], index: 0, kind: input, shape index: {}]   ;;  %s104_s2 = inlined_call_operand.vmem [shape: f32[1,96], index: 2, kind: input, shape index: {}]   ;;  %s105_s3 = inlined_call_operand.vmem [shape: f32[16,96], index: 3, kind: output, shape index: {}]  }
   0x1   :  { %v20_v0 = vld [vmem:[%s102_s1 + $0x10] sm:$0xff]  ;;  %v21_v1 = vld [vmem:[%s102_s1 + $0x18] sm:$0xff]  ;;  %v18_v2 = vld [vmem:[%s102_s1] sm:$0xff] }
   0x2   :  { %v23_v3 = vpack.c.bf16 %v21_v1, %v20_v0  ;;  %v19_v4 = vld [vmem:[%s102_s1 + $0x8] sm:$0xff]  ;;  %v15_v6 = vld [vmem:[%s103_s0] sm:$0xff] }
   0x3   :  { %v22_v5 = vpack.c.bf16 %v19_v4, %v18_v2  ;;  %v16_v7 = vld [vmem:[%s103_s0 + $0x8] sm:$0xff]  ;;  %v54_v9 = vld [vmem:[%s104_s2] ss:$0 sm:$0xff] }
   0x4   :  { %38 = vmatpush.bf16.msra.mxu0 %v23_v3  ;;  %v17_v8 = vpack.c.bf16 %v16_v7, %v15_v6 }
   0x8   :  { %39 = vmatpush.bf16.msra.mxu0 %v22_v5 }
   0xb   :  { %53 = vmatmul.msk.bf16.vlgmr.msra.gmra.mxu0 %vm28_vm0, %v17_v8 }
  0x88   :  { %v41_v10 = vpop.f32.mrf.mxu0 }
  0x89   :  { %v42_v11 = vadd.f32 %v54_v9, %v41_v10 }
  0x8b   :  { %47 = vst.msk [vmem:[%s105_s3] sm:$0xff] %vm46_vm1, %v42_v11 }
  0x90   :  { %v43_v12 = vpop.f32.mrf.mxu0 }
  0x91   :  { %v44_v13 = vadd.f32 %v54_v9, %v43_v12 }
  0x93   :  { %48 = vst.msk [vmem:[%s105_s3 + $0x8] sm:$0xff] %vm46_vm1, %v44_v13 }

// kernel: encoder_atom_layer.5
= control target key start
LH: loop header
LB: loop body
LE: loop exit
PB: predicated region body
PF: predicated region fallthrough
CT: control target
= control target key end

     0   :  { %s597_s0 = inlined_call_operand.vmem [shape: f32[16,32], index: 0, kind: input, shape index: {}]   ;;  %s598_s1 = inlined_call_operand.vmem [shape: f32[1,32], index: 1, kind: input, shape index: {}]   ;;  %s599_s2 = inlined_call_operand.vmem [shape: f32[32,32], index: 2, kind: input, shape index: {}]   ;;  %s600_s3 = inlined_call_operand.vmem [shape: f32[1,32], index: 3, kind: input, shape index: {}]   ;;  %s601_s4 = inlined_call_operand.vmem [shape: f32[16,32], index: 4, kind: input, shape index: {}]   ;;  %s602_s5 = inlined_call_operand.vmem [shape: f32[1,32], index: 5, kind: input, shape index: {}]   ;;  %s603_s6 = inlined_call_operand.vmem [shape: f32[1,32], index: 6, kind: input, shape index: {}]   ;;  %s604_s7 = inlined_call_operand.vmem [shape: f32[32,64], index: 7, kind: input, shape index: {}]   ;;  %s605_s8 = inlined_call_operand.vmem [shape: f32[1,64], index: 8, kind: input, shape index: {}]   ;;  %s606_s9 = inlined_call_operand.vmem [shape: f32[64,32], index: 9, kind: input, shape index: {}]   ;;  %s607_s10 = inlined_call_operand.vmem [shape: f32[1,32], index: 10, kind: input, shape index: {}]   ;;  %s608_s11 = inlined_call_operand.vmem [shape: f32[1,32], index: 11, kind: input, shape index: {}]   ;;  %s609_s12 = inlined_call_operand.vmem [shape: f32[1,32], index: 12, kind: input, shape index: {}]   ;;  %s610_s13 = inlined_call_operand.hbm [shape: f32[16,32], index: 13, kind: output, shape index: {}]  }
   0x1   :  { %v97_v0 = vld [vmem:[%s599_s2 + $0x10] sm:$0xff]  ;;  %v98_v1 = vld [vmem:[%s599_s2 + $0x18] sm:$0xff]  ;;  %v95_v2 = vld [vmem:[%s599_s2] sm:$0xff] }
   0x2   :  { %v100_v3 = vpack.c.bf16 %v98_v1, %v97_v0  ;;  %v96_v4 = vld [vmem:[%s599_s2 + $0x8] sm:$0xff]  ;;  %v46_v5 = vld [vmem:[%s597_s0] sm:$0xff] }
   0x3   :  { %v47_v6 = vld [vmem:[%s597_s0 + $0x8] sm:$0xff]  ;;  %v358_v7 = vld [vmem:[%s598_s1] ss:$0 sm:$0xff]  ;;  %v99_v8 = vpack.c.bf16 %v96_v4, %v95_v2 }
   0x4   :  { %115 = vmatpush.bf16.msra.mxu0 %v100_v3  ;;  %v52_v9 = vadd.f32 %v358_v7, %v46_v5  ;;  %v53_v10 = vadd.f32 %v358_v7, %v47_v6 }
   0x5   :  { %18 = vsyncpa [#allocation3], 0  ;;  %vm105_vm8 = vcmask 261120   ;;  %v359_v40 = vld [vmem:[%s600_s3] ss:$0 sm:$0xff]  ;;  %v124_v47 = vld [vmem:[%s601_s4 + $0x8] sm:$0xff] }
   0x6   :  { %v349_v11 = vmul.f32 -1.442695, %v52_v9  ;;  %v350_v12 = vmul.f32 -1.442695, %v53_v10  ;;  %v123_v42 = vld [vmem:[%s601_s4] sm:$0xff]  ;;  %v414_v51 = vmov 32.0  }
   0x7   :  { %v193_v4 = vld [vmem:[%s604_s7 + $0x10] sm:$0xff]  ;;  %v194_v5 = vld [vmem:[%s604_s7 + $0x18] sm:$0xff]  ;;  %v191_v7 = vld [vmem:[%s604_s7] sm:$0xff]  ;;  %s337_s16 = sshll.u32 %s610_s13, 4  ;;  %s417_s17 = smov 8   ;;  %s338_s16 = int_to_ptr.hbm [resolvable:$true] %s337_s16 }
   0x8   :  { %116 = vmatpush.bf16.msra.mxu0 %v99_v8  ;;  %366 = vpow2.f32 %v349_v11  ;;  %v196_v6 = vpack.c.bf16 %v194_v5, %v193_v4  ;;  %v192_v8 = vld [vmem:[%s604_s7 + $0x8] sm:$0xff] }
   0x9   :  { %368 = vpow2.f32 %v350_v12 }
   0xa   :  { %210 = vmatpush.bf16.msra.mxu1 %v196_v6 }
   0xe   :  { %v367_v13 = vpop.eup %366 }
   0xf   :  { %v369_v14 = vpop.eup %368  ;;  %v60_v15 = vadd.f32 1.0, %v367_v13 }
  0x10   :  { %v61_v16 = vadd.f32 1.0, %v369_v14 }
  0x11   :  { %370 = vrcp.f32 %v60_v15  ;;  %vm67_vm0 = vweird.f32 %v60_v15  ;;  %v73_v20 = vand.u32 2147483648, %v60_v15  ;;  %v71_v23 = vand.u32 2147483647, %v60_v15 }
  0x12   :  { %372 = vrcp.f32 %v61_v16  ;;  %v88_v24 = vand.u32 2147483648, %v61_v16  ;;  %vm82_vm2 = vweird.f32 %v61_v16  ;;  %v86_v26 = vand.u32 2147483647, %v61_v16 }
  0x13   :  { %v74_v28 = vor.u32 1.1754944e-38, %v73_v20  ;;  %vm72_vm5 = vcmp.eq.f32.partialorder %v71_v23, 8.507059e+37  ;;  %374 = vrcp.f32 %v414_v51 }
  0x14   :  { %v89_v31 = vor.u32 1.1754944e-38, %v88_v24  ;;  %vm87_vm7 = vcmp.eq.f32.partialorder %v86_v26, 8.507059e+37 }
  0x17   :  { %v371_v17 = vpop.eup %370 }
  0x18   :  { %v373_v18 = vpop.eup %372  ;;  %v63_v19 = vmul.f32 %v371_v17, %v60_v15  ;;  %vm68_vm1 = vweird.f32 %v371_v17 }
  0x19   :  { %v78_v21 = vmul.f32 %v373_v18, %v61_v16  ;;  %vm83_vm3 = vweird.f32 %v373_v18  ;;  %vm69_vm4 = vmor %vm67_vm0, %vm68_vm1  ;;  %v375_v52 = vpop.eup %374  ;;  %vm253_vm0 = vcmask 523264  }
  0x1a   :  { %v64_v22 = vsub.f32 1.0, %v63_v19  ;;  %vm84_vm6 = vmor %vm82_vm2, %vm83_vm3  ;;  %v134_v53 = vmul.f32 32.0, %v375_v52  ;;  %vm138_vm9 = vweird.f32 %v375_v52 }
  0x1b   :  { %v79_v25 = vsub.f32 1.0, %v78_v21 }
  0x1c   :  { %v65_v27 = vmul.f32 %v371_v17, %v64_v22  ;;  %v135_v54 = vsub.f32 1.0, %v134_v53 }
  0x1d   :  { %v80_v29 = vmul.f32 %v373_v18, %v79_v25 }
  0x1e   :  { %v66_v30 = vadd.f32 %v371_v17, %v65_v27  ;;  %v136_v55 = vmul.f32 %v375_v52, %v135_v54 }
  0x1f   :  { %v81_v32 = vadd.f32 %v373_v18, %v80_v29  ;;  %v360_v29 = vld [vmem:[%s602_s5] ss:$0 sm:$0xff] }
  0x20   :  { %v70_v33 = vsel %vm69_vm4, %v371_v17, %v66_v30  ;;  %v137_v56 = vadd.f32 %v375_v52, %v136_v55 }
  0x21   :  { %v75_v34 = vsel %vm72_vm5, %v74_v28, %v70_v33  ;;  %v85_v35 = vsel %vm84_vm6, %v373_v18, %v81_v32 }
  0x22   :  { %v90_v36 = vsel %vm87_vm7, %v89_v31, %v85_v35  ;;  %v92_v37 = vmul.f32 %v75_v34, %v52_v9  ;;  %v521_v57 = vsel %vm138_vm9, %v375_v52, %v137_v56  ;;  %v361_v34 = vld [vmem:[%s603_s6] ss:$0 sm:$0xff] }
  0x23   :  { %v93_v38 = vmul.f32 %v90_v36, %v53_v10  ;;  %v195_v10 = vpack.c.bf16 %v192_v8, %v191_v7 }
  0x25   :  { %v94_v39 = vpack.c.bf16 %v93_v38, %v92_v37  ;;  %211 = vmatpush.bf16.msra.mxu1 %v195_v10 }
  0x27   :  { %351 = vmatmul.msk.bf16.vlgmr.msra.gmra.mxu0 %vm105_vm8, %v94_v39  ;;  %v243_v39 = vld [vmem:[%s606_s9 + $0x30] sm:$0xff] }
  0xa4   :  { %v118_v41 = vpop.f32.mrf.mxu0 }
  0xa5   :  { %v119_v43 = vadd.f32 %v359_v40, %v118_v41 }
  0xa7   :  { %v125_v44 = vadd.f32 %v123_v42, %v119_v43  ;;  %v241_v42 = vld [vmem:[%s606_s9 + $0x20] sm:$0xff]  ;;  %v242_v43 = vld [vmem:[%s606_s9 + $0x28] sm:$0xff] }
  0xa9   :  { %v127_v45 = vsel %vm105_vm8, %v125_v44, 0.0 }
  0xaa   :  { %128 = vadd.xlane.f32.xlu0 %v127_v45  ;;  %v239_v45 = vld [vmem:[%s606_s9 + $0x10] sm:$0xff] }
  0xac   :  { %v120_v46 = vpop.f32.mrf.mxu0 }
  0xad   :  { %v121_v48 = vadd.f32 %v359_v40, %v120_v46  ;;  %v244_v40 = vld [vmem:[%s606_s9 + $0x38] sm:$0xff] }
  0xae   :  { %v248_v41 = vpack.c.bf16 %v244_v40, %v243_v39  ;;  %v240_v46 = vld [vmem:[%s606_s9 + $0x18] sm:$0xff] }
  0xaf   :  { %v126_v49 = vadd.f32 %v124_v47, %v121_v48  ;;  %v246_v47 = vpack.c.bf16 %v240_v46, %v239_v45  ;;  %v237_v48 = vld [vmem:[%s606_s9] sm:$0xff] }
  0xb0   :  { %261 = vmatpush.bf16.msra.mxu2 %v248_v41  ;;  %v364_v45 = vld [vmem:[%s608_s11] ss:$0 sm:$0xff]  ;;  %s415_s11 = smov [#allocation2]  }
  0xb1   :  { %v130_v50 = vsel %vm105_vm8, %v126_v49, 0.0  ;;  %s335_s7 = sshll.u32 %s415_s11, 4  ;;  %s336_s7 = int_to_ptr.vmem [resolvable:$true] %s335_s7 }
  0xb2   :  { %131 = vadd.xlane.f32.xlu0 %v130_v50  ;;  %v362_v50 = vld [vmem:[%s605_s8] ss:$0 sm:$0xff] }
 0x11d   :  { %v129_v58 = vpop.xlane.xlu0 %128 }
 0x11e   :  { %v140_v59 = vmul.f32 %v521_v57, %v129_v58 }
 0x120   :  { %v142_v60 = vsub.f32 %v125_v44, %v140_v59  ;;  %v247_v44 = vpack.c.bf16 %v242_v43, %v241_v42 }
 0x122   :  { %v144_v61 = vmul.f32 %v142_v60, %v142_v60  ;;  %262 = vmatpush.bf16.msra.mxu2 %v247_v44 }
 0x124   :  { %v146_v62 = vsel %vm105_vm8, %v144_v61, 0.0 }
 0x125   :  { %147 = vadd.xlane.f32.xlu1 %v146_v62  ;;  %v132_v63 = vpop.xlane.xlu0 %131 }
 0x126   :  { %v141_v0 = vmul.f32 %v521_v57, %v132_v63  ;;  %263 = vmatpush.bf16.msra.mxu2 %v246_v47 }
 0x128   :  { %v143_v1 = vsub.f32 %v126_v49, %v141_v0  ;;  %v238_v49 = vld [vmem:[%s606_s9 + $0x8] sm:$0xff] }
 0x129   :  { %v245_v51 = vpack.c.bf16 %v238_v49, %v237_v48  ;;  %v365_v48 = vld [vmem:[%s609_s12] ss:$0 sm:$0xff]  ;;  %s416_s12 = smov 128  }
 0x12a   :  { %v145_v2 = vmul.f32 %v143_v1, %v143_v1 }
 0x12b   :  { %264 = vmatpush.bf16.msra.mxu2 %v245_v51 }
 0x12c   :  { %v149_v3 = vsel %vm105_vm8, %v145_v2, 0.0 }
 0x12d   :  { %150 = vadd.xlane.f32.xlu1 %v149_v3 }
 0x198   :  { %v148_v9 = vpop.xlane.xlu1 %147 }
 0x199   :  { %v152_v11 = vmul.f32 %v148_v9, %v521_v57 }
 0x19b   :  { %v154_v12 = vadd.f32 1e-06, %v152_v11 }
 0x19d   :  { %376 = vrsqrt.f32 %v154_v12  ;;  %vm162_vm11 = vweird.f32 %v154_v12 }
 0x1a0   :  { %v151_v13 = vpop.xlane.xlu1 %150 }
 0x1a1   :  { %v153_v14 = vmul.f32 %v151_v13, %v521_v57 }
 0x1a3   :  { %v377_v15 = vpop.eup %376  ;;  %v155_v16 = vadd.f32 1e-06, %v153_v14 }
 0x1a4   :  { %v157_v17 = vmul.f32 %v377_v15, %v154_v12  ;;  %vm163_vm10 = vweird.f32 %v377_v15  ;;  %v363_v12 = vld [vmem:[%s607_s10] ss:$0 sm:$0xff] }
 0x1a5   :  { %378 = vrsqrt.f32 %v155_v16  ;;  %vm164_vm12 = vmor %vm162_vm11, %vm163_vm10  ;;  %vm172_vm14 = vweird.f32 %v155_v16 }
 0x1a6   :  { %v158_v18 = vmul.f32 %v377_v15, %v157_v17 }
 0x1a8   :  { %v159_v19 = vmul.f32 0.5, %v158_v18 }
 0x1aa   :  { %v160_v20 = vsub.f32 1.5, %v159_v19 }
 0x1ab   :  { %v379_v21 = vpop.eup %378 }
 0x1ac   :  { %v161_v22 = vmul.f32 %v377_v15, %v160_v20  ;;  %v167_v23 = vmul.f32 %v379_v21, %v155_v16  ;;  %vm173_vm13 = vweird.f32 %v379_v21 }
 0x1ad   :  { %vm174_vm15 = vmor %vm172_vm14, %vm173_vm13 }
 0x1ae   :  { %v168_v24 = vmul.f32 %v379_v21, %v167_v23  ;;  %v165_v25 = vsel %vm164_vm12, %v377_v15, %v161_v22 }
 0x1af   :  { %v176_v28 = vmul.f32 %v165_v25, %v142_v60 }
 0x1b0   :  { %v169_v26 = vmul.f32 0.5, %v168_v24 }
 0x1b1   :  { %v182_v33 = vmul.f32 %v360_v29, %v176_v28 }
 0x1b2   :  { %v170_v27 = vsub.f32 1.5, %v169_v26 }
 0x1b3   :  { %v188_v36 = vadd.f32 %v361_v34, %v182_v33 }
 0x1b4   :  { %v171_v30 = vmul.f32 %v379_v21, %v170_v27 }
 0x1b6   :  { %v175_v31 = vsel %vm174_vm15, %v379_v21, %v171_v30 }
 0x1b7   :  { %v177_v32 = vmul.f32 %v175_v31, %v143_v1 }
 0x1b9   :  { %v183_v35 = vmul.f32 %v360_v29, %v177_v32 }
 0x1bb   :  { %v189_v37 = vadd.f32 %v361_v34, %v183_v35 }
 0x1bd   :  { %v190_v38 = vpack.c.bf16 %v189_v37, %v188_v36 }
 0x1bf   :  { %352 = vmatmul.msk.bf16.vlgmr.msra.gmra.mxu1 %vm105_vm8, %v190_v38 }
 0x23c   :  { %v213_v52 = vpop.f32.mrf.mxu1 }
 0x23d   :  { %v214_v53 = vadd.f32 %v362_v50, %v213_v52 }
 0x23f   :  { %v218_v54 = vmul.f32 %v214_v53, %v214_v53 }
 0x241   :  { %v220_v55 = vmul.f32 %v218_v54, %v214_v53 }
 0x243   :  { %v222_v56 = vmul.f32 0.044715, %v220_v55 }
 0x244   :  { %v215_v58 = vpop.f32.mrf.mxu1 }
 0x245   :  { %v224_v59 = vadd.f32 %v222_v56, %v214_v53  ;;  %v216_v60 = vadd.f32 %v362_v50, %v215_v58 }
 0x247   :  { %v226_v61 = vmul.f32 0.7978846, %v224_v59  ;;  %v219_v62 = vmul.f32 %v216_v60, %v216_v60 }
 0x249   :  { %v221_v63 = vmul.f32 %v219_v62, %v216_v60  ;;  %380 = vtanh.f32 %v226_v61 }
 0x24b   :  { %v223_v0 = vmul.f32 0.044715, %v221_v63 }
 0x24d   :  { %v225_v1 = vadd.f32 %v223_v0, %v216_v60 }
 0x24f   :  { %v227_v2 = vmul.f32 0.7978846, %v225_v1  ;;  %v381_v3 = vpop.eup %380 }
 0x250   :  { %v230_v4 = vadd.f32 1.0, %v381_v3 }
 0x251   :  { %382 = vtanh.f32 %v227_v2 }
 0x252   :  { %v232_v7 = vmul.f32 0.5, %v230_v4 }
 0x254   :  { %v234_v9 = vmul.f32 %v232_v7, %v214_v53 }
 0x257   :  { %v383_v5 = vpop.eup %382 }
 0x258   :  { %v231_v6 = vadd.f32 1.0, %v383_v5 }
 0x25a   :  { %v233_v8 = vmul.f32 0.5, %v231_v6 }
 0x25c   :  { %v235_v10 = vmul.f32 %v233_v8, %v216_v60 }
 0x25e   :  { %v236_v11 = vpack.c.bf16 %v235_v10, %v234_v9 }
 0x260   :  { %353 = vmatmul.msk.bf16.vlgmr.msra.gmra.mxu2 %vm253_vm0, %v236_v11 }
 0x2e3   :  { %v266_v13 = vpop.f32.mrf.mxu2 }
 0x2e4   :  { %v267_v14 = vadd.f32 %v363_v12, %v266_v13 }
 0x2e6   :  { %v271_v15 = vadd.f32 %v267_v14, %v188_v36 }
 0x2e8   :  { %v273_v16 = vsel %vm105_vm8, %v271_v15, 0.0 }
 0x2e9   :  { %274 = vadd.xlane.f32.xlu2 %v273_v16 }
 0x2eb   :  { %v268_v17 = vpop.f32.mrf.mxu2 }
 0x2ec   :  { %v269_v18 = vadd.f32 %v363_v12, %v268_v17 }
 0x2ee   :  { %v272_v19 = vadd.f32 %v269_v18, %v189_v37 }
 0x2f0   :  { %v276_v20 = vsel %vm105_vm8, %v272_v19, 0.0 }
 0x2f1   :  { %277 = vadd.xlane.f32.xlu2 %v276_v20 }
 0x35c   :  { %v275_v21 = vpop.xlane.xlu2 %274 }
 0x35d   :  { %v279_v22 = vmul.f32 %v275_v21, %v521_v57 }
 0x35f   :  { %v281_v23 = vsub.f32 %v271_v15, %v279_v22 }
 0x361   :  { %v283_v24 = vmul.f32 %v281_v23, %v281_v23 }
 0x363   :  { %v285_v25 = vsel %vm105_vm8, %v283_v24, 0.0 }
 0x364   :  { %286 = vadd.xlane.f32.xlu0 %v285_v25  ;;  %v278_v26 = vpop.xlane.xlu2 %277 }
 0x365   :  { %v280_v27 = vmul.f32 %v278_v26, %v521_v57 }
 0x367   :  { %v282_v28 = vsub.f32 %v272_v19, %v280_v27 }
 0x369   :  { %v284_v29 = vmul.f32 %v282_v28, %v282_v28 }
 0x36b   :  { %v288_v30 = vsel %vm105_vm8, %v284_v29, 0.0 }
 0x36c   :  { %289 = vadd.xlane.f32.xlu1 %v288_v30 }
 0x3d7   :  { %v287_v31 = vpop.xlane.xlu0 %286 }
 0x3d8   :  { %v291_v32 = vmul.f32 %v287_v31, %v521_v57 }
 0x3da   :  { %v293_v33 = vadd.f32 1e-06, %v291_v32 }
 0x3dc   :  { %384 = vrsqrt.f32 %v293_v33  ;;  %vm301_vm2 = vweird.f32 %v293_v33 }
 0x3df   :  { %v290_v34 = vpop.xlane.xlu1 %289 }
 0x3e0   :  { %v292_v35 = vmul.f32 %v290_v34, %v521_v57 }
 0x3e2   :  { %v385_v36 = vpop.eup %384  ;;  %v294_v37 = vadd.f32 1e-06, %v292_v35 }
 0x3e3   :  { %v296_v38 = vmul.f32 %v385_v36, %v293_v33  ;;  %vm302_vm1 = vweird.f32 %v385_v36 }
 0x3e4   :  { %386 = vrsqrt.f32 %v294_v37  ;;  %vm303_vm3 = vmor %vm301_vm2, %vm302_vm1  ;;  %vm311_vm5 = vweird.f32 %v294_v37 }
 0x3e5   :  { %v297_v39 = vmul.f32 %v385_v36, %v296_v38 }
 0x3e7   :  { %v298_v40 = vmul.f32 0.5, %v297_v39 }
 0x3e9   :  { %v299_v41 = vsub.f32 1.5, %v298_v40 }
 0x3ea   :  { %v387_v42 = vpop.eup %386 }
 0x3eb   :  { %v300_v43 = vmul.f32 %v385_v36, %v299_v41  ;;  %v306_v44 = vmul.f32 %v387_v42, %v294_v37  ;;  %vm312_vm4 = vweird.f32 %v387_v42 }
 0x3ec   :  { %vm313_vm6 = vmor %vm311_vm5, %vm312_vm4 }
 0x3ed   :  { %v304_v46 = vsel %vm303_vm3, %v385_v36, %v300_v43  ;;  %v307_v47 = vmul.f32 %v387_v42, %v306_v44 }
 0x3ee   :  { %v315_v57 = vmul.f32 %v304_v46, %v281_v23 }
 0x3ef   :  { %v308_v49 = vmul.f32 0.5, %v307_v47 }
 0x3f0   :  { %v321_v50 = vmul.f32 %v364_v45, %v315_v57 }
 0x3f1   :  { %v309_v51 = vsub.f32 1.5, %v308_v49 }
 0x3f2   :  { %v327_v52 = vadd.f32 %v365_v48, %v321_v50 }
 0x3f3   :  { %v310_v53 = vmul.f32 %v387_v42, %v309_v51 }
 0x3f4   :  { %329 = vst.msk [vmem:[#allocation2] sm:$0xff] %vm105_vm8, %v327_v52 }
 0x3f5   :  { %v314_v54 = vsel %vm313_vm6, %v387_v42, %v310_v53 }
 0x3f6   :  { %v316_v55 = vmul.f32 %v314_v54, %v282_v28 }
 0x3f8   :  { %v322_v56 = vmul.f32 %v364_v45, %v316_v55 }
 0x3fa   :  { %v328_v58 = vadd.f32 %v365_v48, %v322_v56 }
 0x3fc   :  { %330 = vst.msk [vmem:[#allocation2 + $0x8] sm:$0xff] %vm105_vm8, %v328_v58 }
 0x3fd   :  { %343 = dma.vmem_to_hbm [thread:$0]  %s336_s7, 256, %s338_s16, [#allocation3], %s416_s12, %s416_s12, %s417_s17  }
 0x3fe   :  { %412 = dma.done.wait [#allocation3], 256  }
 0x3ff   :  { %413 = vsyncadd [#allocation3], 4294967040 }
 0x400   :  { %348 = vsyncpa [#allocation3], 1 }

// kernel: encoder_atom_layer.4
= control target key start
LH: loop header
LB: loop body
LE: loop exit
PB: predicated region body
PF: predicated region fallthrough
CT: control target
= control target key end

     0   :  { %13 = vsyncpa [#allocation3], 0  ;;  %s1524_s27 = smov 0   ;;  %s1820_s0 = inlined_call_operand.vmem [shape: f32[2,3], index: 0, kind: input, shape index: {}]   ;;  %s1821_s1 = inlined_call_operand.vmem [shape: f32[2,4,8,8], index: 1, kind: input, shape index: {}]   ;;  %s1822_s2 = inlined_call_operand.vmem [shape: f32[2,4,8,8], index: 2, kind: input, shape index: {}]   ;;  %s1823_s3 = inlined_call_operand.vmem [shape: f32[2,4,8,8], index: 3, kind: input, shape index: {}]   ;;  %s1824_s4 = inlined_call_operand.vmem [shape: f32[2,8,8], index: 4, kind: input, shape index: {}]   ;;  %s1825_s5 = inlined_call_operand.vmem [shape: f32[2,8,8], index: 5, kind: input, shape index: {}]   ;;  %s1826_s6 = inlined_call_operand.vmem [shape: f32[2,8,8], index: 6, kind: input, shape index: {}]   ;;  %s1827_s7 = inlined_call_operand.vmem [shape: f32[3,4,8,32], index: 7, kind: input, shape index: {}]   ;;  %s1828_s8 = inlined_call_operand.vmem [shape: f32[2,8,32], index: 8, kind: output, shape index: {}]  }
   0x1 LB: > { %s1530_s28 = sadd.s32 4294967295, %s1476_s27   ;;  %p1327_p0 = scmp.ge.s32.totalorder %s1476_s27, 1  ;;  %s1476_s27 = sphi %s1524_s27, %s19_s27  }
   0x2   : > { %p248_p1 = scmp.lt.s32.totalorder %s1476_s27, 3  ;;  %s260_s9 = sshll.u32 %s1820_s0, 4  ;;  %s261_s9 = int_to_ptr.vmem [resolvable:$true] %s260_s9 }
   0x3   : > { %p1392_p3 = scmp.eq.s32.totalorder %s1530_s28, 0  ;;  %s1478_s10 = smov [#allocation2]  }
   0x4   : > { %p249_p2 = pnand %p1327_p0, %p248_p1 }
   0x6   : > { %p1388_p4 = pneg %p249_p2  ;;  %321 = sbr.rel (%p249_p2) target bundleno = 1007 (0x3ef), region = 52 }
   0x8   : > { %p1389_p5 = pnand %p1392_p3, %p1388_p4 }
   0xa   : > { %1391 = dma.vmem_to_smem (!%p1389_p5), %s261_s9, 32, %s1478_s10, [#allocation3]  }
   0xb   : > { %1471 = dma.done.wait (%p1392_p3), [#allocation3], 32  }
   0xc   : > { %1473 = vsyncadd (%p1392_p3), [#allocation3], 4294967264 }
   0xd   : > { %328 = sfence }
   0xe   : > { %p378_p6 = scmp.lt.s32.totalorder %s1530_s28, 1  ;;  %vm434_vm0 = vcmask 64512   ;;  %s1346_s19 = sshll.u32 %s1530_s28, 7  ;;  %vm590_vm5 = vcmask 1043456   ;;  %vm752_vm6 = vcmask 261120  }
   0xf   : > { %s761_s20 = sadd.s32 1, %s1346_s19  ;;  %s980_s21 = sadd.s32 2, %s1346_s19 }
  0x10   : > { %s1540_s11 = scalar_select %p378_p6, %s1530_s28, 1 }
  0x11   : > { %s762_s22 = sld [smem:[#allocation2 + %s761_s20]] }
  0x12   : > { %s1543_s12 = sshll.u32 %s1540_s11, 5  ;;  %s981_s23 = sld [smem:[#allocation2 + %s980_s21]] }
  0x13   : > { %s387_s15 = scalar_lea.vmem %s1822_s2, %s1543_s12  ;;  %s382_s18 = scalar_lea.vmem %s1821_s1, %s1543_s12 }
  0x14   : > { %v418_v0 = vld [vmem:[%s387_s15] sm:$0xff]  ;;  %v420_v1 = vld [vmem:[%s387_s15 + $0x10] sm:$0xff]  ;;  %v421_v2 = vld [vmem:[%s387_s15 + $0x18] sm:$0xff]  ;;  %s1563_s24 = sshll.u32 %s1540_s11, 3  ;;  %s530_s28 = sld [smem:[#allocation2 + %s1346_s19]] }
  0x15   : > { %v422_v3 = vpack.c.bf16 %v418_v0, %v418_v0  ;;  %v424_v4 = vpack.c.bf16 %v420_v1, %v420_v1  ;;  %v425_v5 = vpack.c.bf16 %v421_v2, %v421_v2  ;;  %v419_v6 = vld [vmem:[%s387_s15 + $0x8] sm:$0xff]  ;;  %v410_v11 = vld [vmem:[%s382_s18] sm:$0xff]  ;;  %v412_v12 = vld [vmem:[%s382_s18 + $0x10] sm:$0xff]  ;;  %s396_s29 = scalar_lea.vmem %s1824_s4, %s1563_s24  ;;  %s400_s10 = scalar_lea.vmem %s1825_s5, %s1563_s24 }
  0x16   : > { %v423_v10 = vpack.c.bf16 %v419_v6, %v419_v6  ;;  %v413_v13 = vld [vmem:[%s382_s18 + $0x18] sm:$0xff]  ;;  %v411_v15 = vld [vmem:[%s382_s18 + $0x8] sm:$0xff]  ;;  %v414_v16 = vpack.c.bf16 %v410_v11, %v410_v11  ;;  %v416_v17 = vpack.c.bf16 %v412_v12, %v412_v12  ;;  %v528_v20 = vld [vmem:[%s396_s29] sm:$0xff]  ;;  %s404_s14 = scalar_lea.vmem %s1826_s6, %s1563_s24  ;;  %s392_s17 = scalar_lea.vmem %s1823_s3, %s1543_s12 }
  0x17   : > { %v439_v7 = vsel %vm434_vm0, %v422_v3, 0  ;;  %v477_v8 = vsel %vm434_vm0, %v424_v4, 0  ;;  %v496_v9 = vsel %vm434_vm0, %v425_v5, 0  ;;  %v417_v18 = vpack.c.bf16 %v413_v13, %v413_v13  ;;  %v520_v25 = vld [vmem:[%s400_s10] sm:$0xff]  ;;  %v429_v33 = vld [vmem:[%s392_s17 + $0x18] sm:$0xff] }
  0x18   : > { %448 = vmatpush.bf16.xpose.msra.mxu0 %v439_v7  ;;  %486 = vmatpush.bf16.xpose.msra.mxu2 %v477_v8  ;;  %v458_v14 = vsel %vm434_vm0, %v423_v10, 0  ;;  %v415_v19 = vpack.c.bf16 %v411_v15, %v411_v15  ;;  %v763_v21 = vstv %s762_s22  ;;  %v982_v22 = vstv %s981_s23  ;;  %v515_v27 = vld [vmem:[%s404_s14] sm:$0xff]  ;;  %s408_s23 = scalar_lea.vmem %s1828_s8, %s1563_s24 }
  0x19   : > { %505 = vmatpush.bf16.xpose.msra.mxu3 %v496_v9  ;;  %467 = vmatpush.bf16.xpose.msra.mxu1 %v458_v14  ;;  %vm1569_vm1 = vcmp.lt.f32.partialorder %v528_v20, %v763_v21  ;;  %vm1573_vm2 = vcmp.lt.f32.partialorder %v528_v20, %v982_v22  ;;  %vm521_vm3 = vcmp.eq.f32.partialorder %v520_v25, 0.0  ;;  %v426_v25 = vld [vmem:[%s392_s17] sm:$0xff] }
  0x1a   : > { %v531_v28 = vstv %s530_s28 }
  0x1b   : > { %vm1585_vm4 = vcmp.lt.f32.partialorder %v528_v20, %v531_v28  ;;  %v428_v28 = vld [vmem:[%s392_s17 + $0x10] sm:$0xff] }
  0x1f   : > { %1342 = vmatmul.msk.bf16.vlgmr.msra.gmra.mxu0 %vm434_vm0, %v414_v16  ;;  %1344 = vmatmul.msk.bf16.vlgmr.msra.gmra.mxu2 %vm434_vm0, %v416_v17 }
  0x20   : > { %1345 = vmatmul.msk.bf16.vlgmr.msra.gmra.mxu3 %vm434_vm0, %v417_v18  ;;  %1343 = vmatmul.msk.bf16.vlgmr.msra.gmra.mxu1 %vm434_vm0, %v415_v19 }
  0x9c   : > { %v450_v26 = vpop.f32.mrf.mxu0 }
  0x9d   : > { %v511_v29 = vmul.f32 0.35355338, %v450_v26  ;;  %v469_v30 = vpop.f32.mrf.mxu1  ;;  %v430_v26 = vpack.c.bf16 %v426_v25, %v426_v25 }
  0x9e   : > { %v512_v32 = vmul.f32 0.35355338, %v469_v30  ;;  %v427_v30 = vld [vmem:[%s392_s17 + $0x8] sm:$0xff] }
  0x9f   : > { %v516_v31 = vadd.f32 %v515_v27, %v511_v29  ;;  %v432_v29 = vpack.c.bf16 %v428_v28, %v428_v28 }
  0xa0   : > { %v517_v34 = vadd.f32 %v515_v27, %v512_v32  ;;  %v431_v32 = vpack.c.bf16 %v427_v30, %v427_v30 }
  0xa1   : > { %v524_v35 = vsel %vm521_vm3, -1e+12, %v516_v31  ;;  %v1658_v31 = vsel %vm590_vm5, %v432_v29, 0 }
  0xa2   : > { %v488_v36 = vpop.f32.mrf.mxu2  ;;  %v535_v37 = vsel %vm1585_vm4, %v524_v35, -1e+12  ;;  %v1594_v38 = vsel %vm1569_vm1, %v524_v35, -1e+12  ;;  %v1598_v39 = vsel %vm1573_vm2, %v524_v35, -1e+12  ;;  %639 = vmatpush.bf16.msrb.mxu2 %v1658_v31 }
  0xa3   : > { %v513_v40 = vmul.f32 0.35355338, %v488_v36  ;;  %v507_v41 = vpop.f32.mrf.mxu3  ;;  %v539_v42 = vsel %vm434_vm0, %v535_v37, -inf  ;;  %v525_v43 = vsel %vm521_vm3, -1e+12, %v517_v34  ;;  %v771_v22 = vsel %vm434_vm0, %v1594_v38, -inf }
  0xa4   : > { %v514_v44 = vmul.f32 0.35355338, %v507_v41  ;;  %540 = vmax.xlane.f32.xlu1 %v539_v42  ;;  %v452_v45 = vpop.f32.mrf.mxu0  ;;  %v536_v48 = vsel %vm1585_vm4, %v525_v43, -1e+12  ;;  %v1607_v51 = vsel %vm1569_vm1, %v525_v43, -1e+12  ;;  %v433_v34 = vpack.c.bf16 %v429_v33, %v429_v33 }
  0xa5   : > { %v518_v46 = vadd.f32 %v515_v27, %v513_v40  ;;  %v471_v49 = vpop.f32.mrf.mxu1  ;;  %v542_v56 = vsel %vm434_vm0, %v536_v48, -inf  ;;  %v1628_v61 = vsel %vm1573_vm2, %v525_v43, -1e+12  ;;  %v774_v24 = vsel %vm434_vm0, %v1607_v51, -inf }
  0xa6   : > { %v519_v47 = vadd.f32 %v515_v27, %v514_v44  ;;  %v1654_v27 = vsel %vm590_vm5, %v430_v26, 0  ;;  %v1662_v35 = vsel %vm590_vm5, %v431_v32, 0  ;;  %v1666_v36 = vsel %vm590_vm5, %v433_v34, 0 }
  0xa7   : > { %v526_v50 = vsel %vm521_vm3, -1e+12, %v518_v46  ;;  %601 = vmatpush.bf16.msrb.mxu0 %v1654_v27  ;;  %620 = vmatpush.bf16.msrb.mxu1 %v1662_v35 }
  0xa8   : > { %v537_v52 = vsel %vm1585_vm4, %v526_v50, -1e+12  ;;  %v527_v53 = vsel %vm521_vm3, -1e+12, %v519_v47  ;;  %v1614_v54 = vsel %vm1569_vm1, %v526_v50, -1e+12  ;;  %658 = vmatpush.bf16.msrb.mxu3 %v1666_v36 }
  0xa9   : > { %v545_v55 = vsel %vm434_vm0, %v537_v52, -inf  ;;  %v1620_v57 = vsel %vm1569_vm1, %v527_v53, -1e+12  ;;  %v1624_v59 = vsel %vm1573_vm2, %v526_v50, -1e+12  ;;  %v777_v23 = vsel %vm434_vm0, %v1614_v54, -inf }
  0xaa   : > { %546 = vmax.xlane.f32.xlu0 %v545_v55  ;;  %v490_v58 = vpop.f32.mrf.mxu2  ;;  %v1632_v62 = vsel %vm1573_vm2, %v527_v53, -1e+12  ;;  %v538_v63 = vsel %vm1585_vm4, %v527_v53, -1e+12  ;;  %v780_v18 = vsel %vm434_vm0, %v1620_v57, -inf }
  0xab   : > { %v509_v60 = vpop.f32.mrf.mxu3  ;;  %v548_v0 = vsel %vm434_vm0, %v538_v63, -inf }
  0xac   : > { %543 = vmax.xlane.f32.xlu1 %v542_v56 }
  0xb2   : > { %549 = vmax.xlane.f32.xlu0 %v548_v0 }
 0x117   : > { %v541_v1 = vpop.xlane.xlu1 %540 }
 0x118   : > { %v551_v2 = vsub.f32 %v535_v37, %v541_v1 }
 0x11a   : > { %v555_v3 = vmul.f32 1.442695, %v551_v2 }
 0x11c   : > { %1403 = vpow2.f32 %v555_v3 }
 0x11d   : > { %v547_v4 = vpop.xlane.xlu0 %546 }
 0x11e   : > { %v553_v5 = vsub.f32 %v537_v52, %v547_v4 }
 0x11f   : > { %v544_v6 = vpop.xlane.xlu1 %543 }
 0x120   : > { %v559_v7 = vmul.f32 1.442695, %v553_v5  ;;  %v552_v8 = vsub.f32 %v536_v48, %v544_v6 }
 0x122   : > { %v1404_v9 = vpop.eup %1403  ;;  %1405 = vpow2.f32 %v559_v7  ;;  %v557_v10 = vmul.f32 1.442695, %v552_v8  ;;  %v996_v7 = vsel %vm434_vm0, %v1624_v59, -inf }
 0x123   : > { %v563_v11 = vsel %vm434_vm0, %v1404_v9, 0.0 }
 0x124   : > { %1407 = vpow2.f32 %v557_v10  ;;  %564 = vadd.xlane.f32.xlu0 %v563_v11 }
 0x125   : > { %v550_v12 = vpop.xlane.xlu0 %549 }
 0x126   : > { %v554_v13 = vsub.f32 %v538_v63, %v550_v12 }
 0x128   : > { %v1406_v14 = vpop.eup %1405  ;;  %v561_v15 = vmul.f32 1.442695, %v554_v13  ;;  %v993_v13 = vsel %vm434_vm0, %v1628_v61, -inf }
 0x129   : > { %v569_v16 = vsel %vm434_vm0, %v1406_v14, 0.0 }
 0x12a   : > { %v1408_v17 = vpop.eup %1407  ;;  %1409 = vpow2.f32 %v561_v15  ;;  %570 = vadd.xlane.f32.xlu2 %v569_v16  ;;  %v990_v16 = vsel %vm434_vm0, %v1598_v39, -inf }
 0x12b   : > { %v566_v19 = vsel %vm434_vm0, %v1408_v17, 0.0 }
 0x12c   : > { %781 = vmax.xlane.f32.xlu0 %v780_v18  ;;  %567 = vadd.xlane.f32.xlu1 %v566_v19 }
 0x130   : > { %v1410_v20 = vpop.eup %1409 }
 0x131   : > { %v572_v21 = vsel %vm434_vm0, %v1410_v20, 0.0 }
 0x132   : > { %573 = vadd.xlane.f32.xlu2 %v572_v21 }
 0x134   : > { %772 = vmax.xlane.f32.xlu1 %v771_v22  ;;  %v670_v22 = vld [vmem:[%s1827_s7 + $0x10] sm:$0xff] }
 0x135   : > { %v674_v25 = vpack.c.bf16 %v670_v22, %v670_v22  ;;  %v1360_v22 = vld [vmem:[%s1827_s7 + $0x28] sm:$0xff] }
 0x137   : > { %v718_v28 = vsel %vm590_vm5, %v674_v25, 0  ;;  %v893_v25 = vpack.c.bf16 %v1360_v22, %v1360_v22 }
 0x138   : > { %727 = vmatpush.bf16.msra.mxu2 %v718_v28 }
 0x13a   : > { %778 = vmax.xlane.f32.xlu2 %v777_v23  ;;  %v671_v23 = vld [vmem:[%s1827_s7 + $0x18] sm:$0xff] }
 0x13b   : > { %v675_v26 = vpack.c.bf16 %v671_v23, %v671_v23 }
 0x13d   : > { %v737_v29 = vsel %vm590_vm5, %v675_v26, 0 }
 0x13e   : > { %746 = vmatpush.bf16.msra.mxu3 %v737_v29 }
 0x142   : > { %775 = vmax.xlane.f32.xlu2 %v774_v24 }
 0x197   : > { %v565_v37 = vpop.xlane.xlu0 %564 }
 0x198   : > { %1411 = vrcp.f32 %v565_v37 }
 0x19d   : > { %v571_v40 = vpop.xlane.xlu2 %570 }
 0x19e   : > { %v1412_v41 = vpop.eup %1411  ;;  %1413 = vrcp.f32 %v571_v40 }
 0x19f   : > { %v579_v42 = vmul.f32 %v1412_v41, %v1404_v9  ;;  %v782_v43 = vpop.xlane.xlu0 %781  ;;  %v568_v44 = vpop.xlane.xlu1 %567 }
 0x1a0   : > { %v786_v45 = vsub.f32 %v1620_v57, %v782_v43  ;;  %1415 = vrcp.f32 %v568_v44 }
 0x1a1   : > { %v583_v46 = vpack.c.bf16 %v579_v42, %v579_v42 }
 0x1a2   : > { %v793_v47 = vmul.f32 1.442695, %v786_v45 }
 0x1a3   : > { %1347 = vmatmul.msk.bf16.vlgmr.msrb.gmra.mxu0 %vm434_vm0, %v583_v46 }
 0x1a4   : > { %v1414_v48 = vpop.eup %1413  ;;  %1417 = vpow2.f32 %v793_v47 }
 0x1a5   : > { %v581_v49 = vmul.f32 %v1414_v48, %v1406_v14  ;;  %v574_v50 = vpop.xlane.xlu2 %573  ;;  %v999_v14 = vsel %vm434_vm0, %v1632_v62, -inf }
 0x1a6   : > { %v1416_v52 = vpop.eup %1415  ;;  %1419 = vrcp.f32 %v574_v50 }
 0x1a7   : > { %v580_v53 = vmul.f32 %v1416_v52, %v1408_v17  ;;  %v773_v55 = vpop.xlane.xlu1 %772  ;;  %v585_v56 = vpack.c.bf16 %v581_v49, %v581_v49  ;;  %v668_v17 = vld [vmem:[%s1827_s7] sm:$0xff] }
 0x1a8   : > { %v783_v58 = vsub.f32 %v1594_v38, %v773_v55  ;;  %v672_v18 = vpack.c.bf16 %v668_v17, %v668_v17 }
 0x1a9   : > { %1349 = vmatmul.msk.bf16.vlgmr.msrb.gmra.mxu2 %vm434_vm0, %v585_v56  ;;  %v584_v60 = vpack.c.bf16 %v580_v53, %v580_v53 }
 0x1aa   : > { %v1673_v57 = vpop.eup %1417  ;;  %v787_v63 = vmul.f32 1.442695, %v783_v58  ;;  %v680_v19 = vsel %vm590_vm5, %v672_v18, 0  ;;  %861 = vmatpush.bf16.msrb.mxu2 %v1658_v31 }
 0x1ab   : > { %1348 = vmatmul.msk.bf16.vlgmr.msrb.gmra.mxu1 %vm434_vm0, %v584_v60  ;;  %v804_v0 = vsel %vm434_vm0, %v1673_v57, 0.0  ;;  %689 = vmatpush.bf16.msra.mxu0 %v680_v19 }
 0x1ac   : > { %v1420_v1 = vpop.eup %1419  ;;  %1421 = vpow2.f32 %v787_v63  ;;  %805 = vadd.xlane.f32.xlu1 %v804_v0 }
 0x1ad   : > { %v582_v2 = vmul.f32 %v1420_v1, %v1410_v20  ;;  %v779_v3 = vpop.xlane.xlu2 %778  ;;  %v669_v20 = vld [vmem:[%s1827_s7 + $0x8] sm:$0xff] }
 0x1ae   : > { %v785_v4 = vsub.f32 %v1614_v54, %v779_v3  ;;  %v673_v21 = vpack.c.bf16 %v669_v20, %v669_v20 }
 0x1af   : > { %v586_v5 = vpack.c.bf16 %v582_v2, %v582_v2  ;;  %829 = vmatpush.bf16.msrb.mxu0 %v1654_v27 }
 0x1b0   : > { %v791_v38 = vmul.f32 1.442695, %v785_v4  ;;  %v699_v24 = vsel %vm590_vm5, %v673_v21, 0  ;;  %v1362_v21 = vld [vmem:[%s1827_s7 + $0x38] sm:$0xff] }
 0x1b1   : > { %1350 = vmatmul.msk.bf16.vlgmr.msrb.gmra.mxu3 %vm434_vm0, %v586_v5  ;;  %708 = vmatpush.bf16.msra.mxu1 %v699_v24  ;;  %v895_v24 = vpack.c.bf16 %v1362_v21, %v1362_v21 }
 0x1b2   : > { %v1422_v6 = vpop.eup %1421  ;;  %1423 = vpow2.f32 %v791_v38  ;;  %877 = vmatpush.bf16.msrb.mxu3 %v1666_v36 }
 0x1b3   : > { %v795_v8 = vsel %vm434_vm0, %v1422_v6, 0.0  ;;  %v957_v28 = vsel %vm590_vm5, %v895_v24, 0 }
 0x1b4   : > { %997 = vmax.xlane.f32.xlu1 %v996_v7  ;;  %796 = vadd.xlane.f32.xlu2 %v795_v8 }
 0x1b5   : > { %v776_v9 = vpop.xlane.xlu2 %775  ;;  %845 = vmatpush.bf16.msrb.mxu1 %v1662_v35 }
 0x1b6   : > { %v784_v10 = vsub.f32 %v1607_v51, %v776_v9 }
 0x1b8   : > { %v1684_v11 = vpop.eup %1423  ;;  %v789_v12 = vmul.f32 1.442695, %v784_v10 }
 0x1b9   : > { %v801_v54 = vsel %vm434_vm0, %v1684_v11, 0.0 }
 0x1ba   : > { %1425 = vpow2.f32 %v789_v12  ;;  %802 = vadd.xlane.f32.xlu0 %v801_v54 }
 0x1bc   : > { %994 = vmax.xlane.f32.xlu1 %v993_v13  ;;  %1000 = vmax.xlane.f32.xlu2 %v999_v14 }
 0x1c0   : > { %v1692_v15 = vpop.eup %1425 }
 0x1c1   : > { %v798_v51 = vsel %vm434_vm0, %v1692_v15, 0.0 }
 0x1c2   : > { %799 = vadd.xlane.f32.xlu0 %v798_v51 }
 0x1ca   : > { %991 = vmax.xlane.f32.xlu0 %v990_v16 }
 0x21f   : > { %v806_v30 = vpop.xlane.xlu1 %805 }
 0x220   : > { %v603_v32 = vpop.f32.mrf.mxu0 }
 0x221   : > { %v664_v33 = vpack.c.bf16 %v603_v32, %v603_v32 }
 0x223   : > { %1351 = vmatmul.msk.bf16.vlgmr.msra.gmra.mxu0 %vm434_vm0, %v664_v33 }
 0x227   : > { %v797_v34 = vpop.xlane.xlu2 %796  ;;  %v998_v37 = vpop.xlane.xlu1 %997 }
 0x228   : > { %1427 = vrcp.f32 %v797_v34  ;;  %v1004_v40 = vsub.f32 %v1624_v59, %v998_v37  ;;  %v605_v41 = vpop.f32.mrf.mxu0  ;;  %v622_v42 = vpop.f32.mrf.mxu1 }
 0x229   : > { %v665_v43 = vpack.c.bf16 %v622_v42, %v622_v42 }
 0x22a   : > { %v1010_v44 = vmul.f32 1.442695, %v1004_v40 }
 0x22b   : > { %1352 = vmatmul.msk.bf16.vlgmr.msra.gmra.mxu1 %vm434_vm0, %v665_v43 }
 0x22c   : > { %1429 = vpow2.f32 %v1010_v44  ;;  %v641_v45 = vpop.f32.mrf.mxu2 }
 0x22d   : > { %v666_v46 = vpack.c.bf16 %v641_v45, %v641_v45  ;;  %v803_v47 = vpop.xlane.xlu0 %802 }
 0x22e   : > { %v1428_v48 = vpop.eup %1427  ;;  %1431 = vrcp.f32 %v803_v47 }
 0x22f   : > { %v811_v49 = vmul.f32 %v1428_v48, %v1422_v6  ;;  %1353 = vmatmul.msk.bf16.vlgmr.msra.gmra.mxu2 %vm434_vm0, %v666_v46  ;;  %v1001_v50 = vpop.xlane.xlu2 %1000  ;;  %v995_v52 = vpop.xlane.xlu1 %994 }
 0x230   : > { %v1005_v53 = vsub.f32 %v1632_v62, %v1001_v50  ;;  %v1003_v59 = vsub.f32 %v1628_v61, %v995_v52  ;;  %v624_v55 = vpop.f32.mrf.mxu1 }
 0x231   : > { %v815_v56 = vpack.c.bf16 %v811_v49, %v811_v49 }
 0x232   : > { %v1724_v58 = vpop.eup %1429  ;;  %v1012_v60 = vmul.f32 1.442695, %v1005_v53  ;;  %v1008_v63 = vmul.f32 1.442695, %v1003_v59 }
 0x233   : > { %1355 = vmatmul.msk.bf16.vlgmr.msrb.gmra.mxu0 %vm434_vm0, %v815_v56  ;;  %v1020_v0 = vsel %vm434_vm0, %v1724_v58, 0.0 }
 0x234   : > { %1433 = vpow2.f32 %v1012_v60  ;;  %v643_v1 = vpop.f32.mrf.mxu2  ;;  %v660_v2 = vpop.f32.mrf.mxu3  ;;  %1021 = vadd.xlane.f32.xlu2 %v1020_v0 }
 0x235   : > { %1435 = vpow2.f32 %v1008_v63  ;;  %v667_v3 = vpack.c.bf16 %v660_v2, %v660_v2  ;;  %v800_v62 = vpop.xlane.xlu0 %799  ;;  %v1432_v4 = vpop.eup %1431 }
 0x236   : > { %1437 = vrcp.f32 %v800_v62  ;;  %v813_v61 = vmul.f32 %v1432_v4, %v1684_v11 }
 0x237   : > { %1354 = vmatmul.msk.bf16.vlgmr.msra.gmra.mxu3 %vm434_vm0, %v667_v3  ;;  %1439 = vrcp.f32 %v806_v30 }
 0x238   : > { %v817_v10 = vpack.c.bf16 %v813_v61, %v813_v61  ;;  %966 = vmatpush.bf16.msra.mxu3 %v957_v28 }
 0x23a   : > { %v1731_v5 = vpop.eup %1433 }
 0x23b   : > { %v1733_v38 = vpop.eup %1435  ;;  %v1023_v6 = vsel %vm434_vm0, %v1731_v5, 0.0 }
 0x23c   : > { %v1438_v7 = vpop.eup %1437  ;;  %v662_v8 = vpop.f32.mrf.mxu3  ;;  %1024 = vadd.xlane.f32.xlu0 %v1023_v6  ;;  %v1017_v9 = vsel %vm434_vm0, %v1733_v38, 0.0 }
 0x23d   : > { %v812_v12 = vmul.f32 %v1438_v7, %v1692_v15  ;;  %1018 = vadd.xlane.f32.xlu2 %v1017_v9  ;;  %v992_v54 = vpop.xlane.xlu0 %991  ;;  %v1440_v13 = vpop.eup %1439 }
 0x23e   : > { %v1002_v11 = vsub.f32 %v1598_v39, %v992_v54  ;;  %v814_v16 = vmul.f32 %v1440_v13, %v1673_v57  ;;  %v1359_v39 = vld [vmem:[%s1827_s7 + $0x20] sm:$0xff]  ;;  %v1361_v57 = vld [vmem:[%s1827_s7 + $0x30] sm:$0xff] }
 0x23f   : > { %v816_v14 = vpack.c.bf16 %v812_v12, %v812_v12  ;;  %1357 = vmatmul.msk.bf16.vlgmr.msrb.gmra.mxu2 %vm434_vm0, %v817_v10  ;;  %v892_v19 = vpack.c.bf16 %v1359_v39, %v1359_v39  ;;  %v894_v23 = vpack.c.bf16 %v1361_v57, %v1361_v57 }
 0x240   : > { %v1006_v51 = vmul.f32 1.442695, %v1002_v11  ;;  %v818_v17 = vpack.c.bf16 %v814_v16, %v814_v16 }
 0x241   : > { %1356 = vmatmul.msk.bf16.vlgmr.msrb.gmra.mxu1 %vm434_vm0, %v816_v14  ;;  %v900_v20 = vsel %vm590_vm5, %v892_v19, 0  ;;  %v938_v26 = vsel %vm590_vm5, %v894_v23, 0 }
 0x242   : > { %1441 = vpow2.f32 %v1006_v51  ;;  %909 = vmatpush.bf16.msra.mxu0 %v900_v20  ;;  %947 = vmatpush.bf16.msra.mxu2 %v938_v26  ;;  %v1372_v51 = vld [vmem:[%s1827_s7 + $0x48] sm:$0xff] }
 0x243   : > { %v1112_v16 = vpack.c.bf16 %v1372_v51, %v1372_v51 }
 0x246   : > { %1048 = vmatpush.bf16.msrb.mxu0 %v1654_v27  ;;  %v919_v27 = vsel %vm590_vm5, %v893_v25, 0  ;;  %1080 = vmatpush.bf16.msrb.mxu2 %v1658_v31 }
 0x247   : > { %1358 = vmatmul.msk.bf16.vlgmr.msrb.gmra.mxu3 %vm434_vm0, %v818_v17  ;;  %928 = vmatpush.bf16.msra.mxu1 %v919_v27  ;;  %v1138_v17 = vsel %vm590_vm5, %v1112_v16, 0 }
 0x248   : > { %v1442_v18 = vpop.eup %1441  ;;  %1096 = vmatpush.bf16.msrb.mxu3 %v1666_v36 }
 0x249   : > { %v1014_v15 = vsel %vm434_vm0, %v1442_v18, 0.0 }
 0x24a   : > { %1015 = vadd.xlane.f32.xlu1 %v1014_v15  ;;  %v1374_v15 = vld [vmem:[%s1827_s7 + $0x58] sm:$0xff] }
 0x24b   : > { %1064 = vmatpush.bf16.msrb.mxu1 %v1662_v35  ;;  %v1114_v19 = vpack.c.bf16 %v1374_v15, %v1374_v15 }
 0x24d   : > { %v1176_v57 = vsel %vm590_vm5, %v1114_v19, 0 }
 0x2a0   : > { %v691_v29 = vpop.f32.mrf.mxu0 }
 0x2a1   : > { %v753_v33 = vsel %vm752_vm6, %v691_v29, 0.0 }
 0x2a7   : > { %v1022_v31 = vpop.xlane.xlu2 %1021 }
 0x2a8   : > { %v693_v30 = vpop.f32.mrf.mxu0  ;;  %v710_v32 = vpop.f32.mrf.mxu1 }
 0x2a9   : > { %v754_v34 = vsel %vm752_vm6, %v710_v32, 0.0 }
 0x2aa   : > { %v755_v37 = vadd.f32 %v754_v34, %v753_v33 }
 0x2af   : > { %v1025_v4 = vpop.xlane.xlu0 %1024 }
 0x2b0   : > { %v712_v40 = vpop.f32.mrf.mxu1  ;;  %v831_v41 = vpop.f32.mrf.mxu0 }
 0x2b1   : > { %v883_v42 = vpack.c.bf16 %v831_v41, %v831_v41  ;;  %v1019_v52 = vpop.xlane.xlu2 %1018 }
 0x2b2   : > { %v729_v43 = vpop.f32.mrf.mxu2 }
 0x2b3   : > { %v756_v44 = vsel %vm752_vm6, %v729_v43, 0.0  ;;  %1363 = vmatmul.msk.bf16.vlgmr.msra.gmra.mxu0 %vm434_vm0, %v883_v42 }
 0x2b4   : > { %v757_v45 = vadd.f32 %v756_v44, %v755_v37 }
 0x2b8   : > { %v833_v36 = vpop.f32.mrf.mxu0 }
 0x2ba   : > { %v731_v35 = vpop.f32.mrf.mxu2  ;;  %v748_v46 = vpop.f32.mrf.mxu3 }
 0x2bb   : > { %v758_v47 = vsel %vm752_vm6, %v748_v46, 0.0 }
 0x2bc   : > { %v1771_v48 = vadd.f32 %v758_v47, %v757_v45 }
 0x2bd   : > { %v1016_v49 = vpop.xlane.xlu1 %1015 }
 0x2be   : > { %1443 = vrcp.f32 %v1016_v49  ;;  %v847_v50 = vpop.f32.mrf.mxu1 }
 0x2bf   : > { %v884_v53 = vpack.c.bf16 %v847_v50, %v847_v50  ;;  %1445 = vrcp.f32 %v1019_v52 }
 0x2c0   : > { %1447 = vrcp.f32 %v1022_v31 }
 0x2c1   : > { %1364 = vmatmul.msk.bf16.vlgmr.msra.gmra.mxu1 %vm434_vm0, %v884_v53  ;;  %1449 = vrcp.f32 %v1025_v4 }
 0x2c2   : > { %v750_v59 = vpop.f32.mrf.mxu3  ;;  %v863_v55 = vpop.f32.mrf.mxu2  ;;  %1147 = vmatpush.bf16.msra.mxu1 %v1138_v17 }
 0x2c3   : > { %v885_v56 = vpack.c.bf16 %v863_v55, %v863_v55 }
 0x2c4   : > { %v1444_v60 = vpop.eup %1443 }
 0x2c5   : > { %v1030_v63 = vmul.f32 %v1444_v60, %v1442_v18  ;;  %1365 = vmatmul.msk.bf16.vlgmr.msra.gmra.mxu2 %vm434_vm0, %v885_v56  ;;  %v1446_v2 = vpop.eup %1445  ;;  %v1373_v18 = vld [vmem:[%s1827_s7 + $0x50] sm:$0xff] }
 0x2c6   : > { %v849_v0 = vpop.f32.mrf.mxu1  ;;  %v1031_v61 = vmul.f32 %v1446_v2, %v1733_v38  ;;  %v1448_v7 = vpop.eup %1447  ;;  %v1371_v38 = vld [vmem:[%s1827_s7 + $0x40] sm:$0xff]  ;;  %v1113_v39 = vpack.c.bf16 %v1373_v18, %v1373_v18 }
 0x2c7   : > { %v1034_v1 = vpack.c.bf16 %v1030_v63, %v1030_v63  ;;  %v1032_v8 = vmul.f32 %v1448_v7, %v1724_v58  ;;  %v1450_v54 = vpop.eup %1449  ;;  %v1111_v14 = vpack.c.bf16 %v1371_v38, %v1371_v38 }
 0x2c8   : > { %v1035_v9 = vpack.c.bf16 %v1031_v61, %v1031_v61  ;;  %v1033_v13 = vmul.f32 %v1450_v54, %v1731_v5  ;;  %v1157_v20 = vsel %vm590_vm5, %v1113_v39, 0 }
 0x2c9   : > { %1367 = vmatmul.msk.bf16.vlgmr.msrb.gmra.mxu0 %vm434_vm0, %v1034_v1  ;;  %v1036_v12 = vpack.c.bf16 %v1032_v8, %v1032_v8  ;;  %v1119_v58 = vsel %vm590_vm5, %v1111_v14, 0  ;;  %1166 = vmatpush.bf16.msra.mxu2 %v1157_v20 }
 0x2ca   : > { %v865_v3 = vpop.f32.mrf.mxu2  ;;  %v879_v62 = vpop.f32.mrf.mxu3  ;;  %v1037_v11 = vpack.c.bf16 %v1033_v13, %v1033_v13  ;;  %1128 = vmatpush.bf16.msra.mxu0 %v1119_v58 }
 0x2cb   : > { %v886_v6 = vpack.c.bf16 %v879_v62, %v879_v62 }
 0x2cd   : > { %1366 = vmatmul.msk.bf16.vlgmr.msra.gmra.mxu3 %vm434_vm0, %v886_v6 }
 0x2ce   : > { %1185 = vmatpush.bf16.msra.mxu3 %v1176_v57 }
 0x2d1   : > { %1368 = vmatmul.msk.bf16.vlgmr.msrb.gmra.mxu1 %vm434_vm0, %v1035_v9 }
 0x2d2   : > { %v881_v10 = vpop.f32.mrf.mxu3 }
 0x2d5   : > { %1369 = vmatmul.msk.bf16.vlgmr.msrb.gmra.mxu2 %vm434_vm0, %v1036_v12 }
 0x2dd   : > { %1370 = vmatmul.msk.bf16.vlgmr.msrb.gmra.mxu3 %vm434_vm0, %v1037_v11 }
 0x330   : > { %v911_v5 = vpop.f32.mrf.mxu0 }
 0x331   : > { %v972_v23 = vsel %vm752_vm6, %v911_v5, 0.0 }
 0x338   : > { %v913_v21 = vpop.f32.mrf.mxu0 }
 0x33e   : > { %v930_v22 = vpop.f32.mrf.mxu1 }
 0x33f   : > { %v973_v24 = vsel %vm752_vm6, %v930_v22, 0.0 }
 0x340   : > { %v974_v25 = vadd.f32 %v973_v24, %v972_v23 }
 0x346   : > { %v932_v26 = vpop.f32.mrf.mxu1  ;;  %v1050_v28 = vpop.f32.mrf.mxu0 }
 0x347   : > { %v1102_v27 = vpack.c.bf16 %v1050_v28, %v1050_v28 }
 0x348   : > { %v949_v29 = vpop.f32.mrf.mxu2 }
 0x349   : > { %v975_v30 = vsel %vm752_vm6, %v949_v29, 0.0  ;;  %1375 = vmatmul.msk.bf16.vlgmr.msra.gmra.mxu0 %vm434_vm0, %v1102_v27 }
 0x34a   : > { %v976_v32 = vadd.f32 %v975_v30, %v974_v25 }
 0x34e   : > { %v1052_v33 = vpop.f32.mrf.mxu0  ;;  %v1066_v34 = vpop.f32.mrf.mxu1 }
 0x34f   : > { %v1103_v37 = vpack.c.bf16 %v1066_v34, %v1066_v34 }
 0x350   : > { %v951_v40 = vpop.f32.mrf.mxu2  ;;  %v968_v41 = vpop.f32.mrf.mxu3 }
 0x351   : > { %v977_v42 = vsel %vm752_vm6, %v968_v41, 0.0  ;;  %1376 = vmatmul.msk.bf16.vlgmr.msra.gmra.mxu1 %vm434_vm0, %v1103_v37 }
 0x352   : > { %v978_v43 = vadd.f32 %v977_v42, %v976_v32 }
 0x354   : > { %v979_v44 = vadd.f32 %v978_v43, %v1771_v48 }
 0x356   : > { %v1068_v45 = vpop.f32.mrf.mxu1 }
 0x358   : > { %v970_v31 = vpop.f32.mrf.mxu3  ;;  %v1082_v36 = vpop.f32.mrf.mxu2 }
 0x359   : > { %v1104_v35 = vpack.c.bf16 %v1082_v36, %v1082_v36 }
 0x35b   : > { %1377 = vmatmul.msk.bf16.vlgmr.msra.gmra.mxu2 %vm434_vm0, %v1104_v35 }
 0x360   : > { %v1084_v46 = vpop.f32.mrf.mxu2  ;;  %v1098_v47 = vpop.f32.mrf.mxu3 }
 0x361   : > { %v1105_v49 = vpack.c.bf16 %v1098_v47, %v1098_v47 }
 0x363   : > { %1378 = vmatmul.msk.bf16.vlgmr.msra.gmra.mxu3 %vm434_vm0, %v1105_v49 }
 0x368   : > { %v1100_v50 = vpop.f32.mrf.mxu3 }
 0x3c6   : > { %v1130_v52 = vpop.f32.mrf.mxu0 }
 0x3c7   : > { %v1191_v60 = vsel %vm752_vm6, %v1130_v52, 0.0 }
 0x3ce   : > { %v1132_v53 = vpop.f32.mrf.mxu0  ;;  %v1149_v59 = vpop.f32.mrf.mxu1 }
 0x3cf   : > { %v1192_v48 = vsel %vm752_vm6, %v1149_v59, 0.0 }
 0x3d0   : > { %v1193_v0 = vadd.f32 %v1192_v48, %v1191_v60 }
 0x3d6   : > { %v1151_v55 = vpop.f32.mrf.mxu1 }
 0x3de   : > { %v1168_v56 = vpop.f32.mrf.mxu2 }
 0x3df   : > { %v1194_v63 = vsel %vm752_vm6, %v1168_v56, 0.0 }
 0x3e0   : > { %v1195_v1 = vadd.f32 %v1194_v63, %v1193_v0 }
 0x3e6   : > { %v1170_v2 = vpop.f32.mrf.mxu2  ;;  %v1187_v3 = vpop.f32.mrf.mxu3 }
 0x3e7   : > { %v1196_v62 = vsel %vm752_vm6, %v1187_v3, 0.0 }
 0x3e8   : > { %v1197_v4 = vadd.f32 %v1196_v62, %v1195_v1 }
 0x3ea   : > { %v1198_v61 = vadd.f32 %v1197_v4, %v979_v44 }
 0x3ec   : > { %1199 = vst.msk [vmem:[%s408_s23] sm:$0xff] %vm752_vm6, %v1198_v61 }
 0x3ee   : > { %v1189_v6 = vpop.f32.mrf.mxu3 }
 0x3ef PF: > { %s19_s27 = sadd.s32 1, %s1476_s27  }
 0x3f0   : > { %p16_p7 = scmp.ge.s32.totalorder %s19_s27, 4  }
 0x3f2   :  { %18 = sbr.rel (!%p16_p7) target bundleno = 1 (0x1), region = 104 }
 0x3f7   :  { %1219 = vsyncpa [#allocation3], 1 }
 0x3f8   :  { %1221 = vsyncpa [#allocation3 + $0x1], 1 }

</bundles_post_ra>
